<compile_context>
chip_gen: v6e
topology: v6e:2x2x1
jax: 0.10.0
libtpu: 0.0.40
codegen_flags: <defaults>
</compile_context>

<pallas_src>
import jax
import jax.numpy as jnp
from jax import lax
from jax.experimental import pallas as pl
from jax.experimental.pallas import tpu as pltpu


def gru_text_encoder_kernel(tmax_ref, len_ref, gi_ref, whh_ref, bhn_ref,
                            wlin_ref, blin_ref, out_ref, h_scratch):
    """GRU recurrence over one time-chunk + (on last chunk) the final linear.

    tmax_ref : (1,)            i32 SMEM  max(lengths)  (scalar prefetch)
    len_ref  : (Bt, 1)         i32 VMEM  per-sample lengths (batch tile)
    gi_ref   : (Tc, Bt, 3H)    stream dtype, precomputed x@W_ih^T + b_ih + b_h{r,z}
    whh_ref  : (H, 3H)         stream dtype  (= weight_hh_l0.T, gates [r|z|n])
    bhn_ref  : (1, H)          f32   n-gate hidden bias (must stay inside r*(...))
    wlin_ref : (H, 2Z)         f32   (= linear.weight.T)
    blin_ref : (1, 2Z)         f32
    out_ref  : (Bt, 2Z)        f32   combined [mu | logvar]  (lane-dense slab)
    h_scratch: (Bt, H)         f32   hidden state, carried across the time axis
    """
    Tc = gi_ref.shape[0]
    H = h_scratch.shape[1]
    tc = pl.program_id(1)
    n_tc = pl.num_programs(1)

    @pl.when(tc == 0)
    def _init():
        h_scratch[...] = jnp.zeros_like(h_scratch)

    t_max = tmax_ref[0]
    lengths = len_ref[...]          # (Bt, 1) int32
    whh = whh_ref[...]              # hoisted weight load (once per chunk)
    bhn = bhn_ref[...]              # (1, H) f32

    # Single chunk-level guard instead of Tc per-step scf.if boundaries; the
    # per-sample freeze below keeps partially-valid chunks correct.
    @pl.when(tc * Tc < t_max)
    def _chunk():
        # Tc is static & small -> fully unrolled.
        # TODO(synk): switch to lax.fori_loop(0, Tc, body, unroll=True) if vreg
        # spills appear at production H / larger Tc.
        for lt in range(Tc):
            t = tc * Tc + lt
            h = h_scratch[...]                                        # (Bt, H) f32
            gi = gi_ref[lt].astype(jnp.float32)                       # (Bt, 3H)
            gh = jnp.dot(h.astype(whh.dtype), whh,
                         preferred_element_type=jnp.float32)          # (Bt, 3H) f32
            r = jax.nn.sigmoid(gi[:, 0:H] + gh[:, 0:H])
            z = jax.nn.sigmoid(gi[:, H:2 * H] + gh[:, H:2 * H])
            n = jnp.tanh(gi[:, 2 * H:3 * H] + r * (gh[:, 2 * H:3 * H] + bhn))
            h_new = (1.0 - z) * n + z * h
            # packed-sequence semantics: freeze rows whose length is exhausted
            h_scratch[...] = jnp.where(t < lengths, h_new, h)

    @pl.when(tc == n_tc - 1)
    def _final():
        out_ref[...] = (jnp.dot(h_scratch[...], wlin_ref[...],
                                preferred_element_type=jnp.float32)
                        + blin_ref[...])


def _tensorcores_per_chip():
    """Megacore heuristic: v7x has 2 TensorCores per chip, v5e/v6e have 1."""
    try:
        kind = jax.devices()[0].device_kind.lower()
        if "v7" in kind or "7x" in kind:
            return 2
    except Exception:
        pass
    return 1


def _pick_b_tile(b_pad, n_cores, sub):
    """Split the batch across TensorCores only when it actually helps."""
    if n_cores >= 2 and b_pad >= 2 * sub:
        cand = (b_pad // 2) // sub * sub
        while cand >= sub:
            if b_pad % cand == 0:
                return cand
            cand -= sub
    return b_pad        # 1-TC chips: one big tile (no pointless extra grid steps)


def text_encoder_forward(seq, lengths, params, *, t_chunk=None, b_tile=None,
                         stream_dtype=jnp.bfloat16):
    """Glue (XLA): vocab-table input projection + layout; one Pallas call for the GRU."""
    emb = params["embedding"]                      # (V, E)
    B, T = seq.shape
    H = params["w_hh"].shape[1]
    Z = params["w_lin"].shape[0] // 2
    G3 = 3 * H
    sdt = jnp.dtype(stream_dtype)
    sub = 16 if sdt.itemsize == 2 else 8           # sublane alignment for batch tiles

    # --- batch padding to a sublane-aligned size (padded rows: length 0 -> frozen h=0)
    Bp = ((B + sub - 1) // sub) * sub
    seq_p = jnp.pad(seq, ((0, Bp - B), (0, 0))) if Bp != B else seq
    len_p = jnp.pad(lengths, (0, Bp - B)) if Bp != B else lengths

    # --- fold embedding lookup + input projection + b_ih + b_h{r,z} into a (V,3H)
    #     table; per-token gates are gathered straight into TIME-MAJOR layout
    #     (no (T,B,3H) HBM transpose round-trip).
    b_hh = params["b_hh"]
    b_rz = jnp.concatenate([b_hh[:2 * H], jnp.zeros((H,), b_hh.dtype)])
    emb_proj = (jnp.dot(emb, params["w_ih"].T, precision=lax.Precision.HIGHEST)
                + params["b_ih"] + b_rz)                               # (V, 3H)
    gi_tm = jnp.take(emb_proj, seq_p.T, axis=0).astype(sdt)            # (T, Bp, 3H)

    whh = params["w_hh"].T.astype(sdt)                                 # (H, 3H)
    bhn = b_hh[2 * H:].reshape(1, H).astype(jnp.float32)               # (1, H)
    wlin = params["w_lin"].T.astype(jnp.float32)                       # (H, 2Z)
    blin = params["b_lin"].reshape(1, -1).astype(jnp.float32)          # (1, 2Z)
    len2d = len_p.reshape(Bp, 1).astype(jnp.int32)
    t_max = jnp.max(lengths).astype(jnp.int32).reshape(1)

    # --- tiling
    n_cores = _tensorcores_per_chip()
    if b_tile is None or Bp % b_tile != 0 or b_tile % sub != 0:
        b_tile = _pick_b_tile(Bp, n_cores, sub)
    if t_chunk is None:
        # size the time chunk off a VMEM budget for the double-buffered gi stream
        per_step = 2 * b_tile * G3 * sdt.itemsize
        t_chunk = int(max(1, min(T, (8 << 20) // max(per_step, 1), 32)))
    n_tc = -(-T // t_chunk)
    t_pad = n_tc * t_chunk
    if t_pad != T:
        gi_tm = jnp.pad(gi_tm, ((0, t_pad - T), (0, 0), (0, 0)))
    n_b = Bp // b_tile

    # VMEM headroom: only override the scoped default when actually needed.
    vmem_est = (2 * t_chunk * b_tile * G3 * sdt.itemsize
                + 2 * (H * G3 * sdt.itemsize + H * 4 + H * 2 * Z * 4 + 2 * Z * 4)
                + 2 * b_tile * 4 + 2 * b_tile * 2 * Z * 4 + b_tile * H * 4)
    vmem_limit = None
    if vmem_est > (12 << 20):
        vmem_limit = int(min(2 * vmem_est + (4 << 20), 56 << 20))

    def _call(single_buffer_weights):
        def wspec(shape):
            imap = lambda b, tc, tmax: (0, 0)
            if single_buffer_weights:
                # grid-invariant weights: one buffer, no pointless double-buffering
                return pl.BlockSpec(shape, imap, pipeline_mode=pl.Buffered(1))
            return pl.BlockSpec(shape, imap)

        grid_spec = pltpu.PrefetchScalarGridSpec(
            num_scalar_prefetch=1,
            # Time axis LAST (iterated fastest) -- the tc==0 init / tc==last
            # finalize logic relies on this ordering.
            grid=(n_b, n_tc),
            in_specs=[
                pl.BlockSpec((b_tile, 1), lambda b, tc, tmax: (b, 0)),              # lengths
                pl.BlockSpec((t_chunk, b_tile, G3), lambda b, tc, tmax: (tc, b, 0)),  # gi
                # TODO(synk): on v5e consider pipeline_mode=pl.Buffered(3) on the gi
                # spec to hide its lower HBM bandwidth behind more compute chunks.
                wspec((H, G3)),                                                     # whh
                wspec((1, H)),                                                      # bhn
                wspec((H, 2 * Z)),                                                  # wlin
                wspec((1, 2 * Z)),                                                  # blin
            ],
            out_specs=pl.BlockSpec((b_tile, 2 * Z), lambda b, tc, tmax: (b, 0)),
            scratch_shapes=[pltpu.VMEM((b_tile, H), jnp.float32)],
        )
        out = pl.pallas_call(
            gru_text_encoder_kernel,
            out_shape=jax.ShapeDtypeStruct((Bp, 2 * Z), jnp.float32),
            grid_spec=grid_spec,
            compiler_params=pltpu.CompilerParams(
                dimension_semantics=("parallel", "arbitrary"),
                vmem_limit_bytes=vmem_limit),
        )(t_max, len2d, gi_tm, whh, bhn, wlin, blin)
        return jax.block_until_ready(out)

    try:
        out = _call(True)
    except Exception:
        # pl.Buffered(1) not supported by this jax/mosaic version -> default buffering.
        out = _call(False)

    out = out[:B]
    # Lane-dense single output slab; mu/logvar split is a free XLA slice.
    # TODO(synk): for production shapes choose H so 3H and 2Z are multiples of 128
    # (e.g. H=256 -> 3H=768) so gi/whh loads and the output store are unmasked.
    return out[:, :Z], out[:, Z:]


def text_encoder_reference(seq, lengths, params):
    """Pure-JAX reference mirroring the PyTorch forward (for sanity checking)."""
    emb = params["embedding"]
    x = jnp.take(emb, seq, axis=0)               # (B, T, E)
    B, T, _ = x.shape
    H = params["w_hh"].shape[1]
    wih, whh = params["w_ih"], params["w_hh"]
    bih, bhh = params["b_ih"], params["b_hh"]

    def cell(h, x_t):
        gi = x_t @ wih.T + bih
        gh = h @ whh.T + bhh
        i_r, i_z, i_n = jnp.split(gi, 3, axis=1)
        h_r, h_z, h_n = jnp.split(gh, 3, axis=1)
        r = jax.nn.sigmoid(i_r + h_r)
        z = jax.nn.sigmoid(i_z + h_z)
        n = jnp.tanh(i_n + r * h_n)
        return (1.0 - z) * n + z * h

    h = jnp.zeros((B, H), jnp.float32)
    for t in range(T):
        h_new = cell(h, x[:, t, :])
        h = jnp.where((t < lengths)[:, None], h_new, h)
    out = h @ params["w_lin"].T + params["b_lin"]
    Z = out.shape[1] // 2
    return out[:, :Z], out[:, Z:]


def init_params(key, vocab_size, embedding_dim, hidden_dim, z_dim):
    ks = jax.random.split(key, 7)
    s = 0.1
    return {
        "embedding": s * jax.random.normal(ks[0], (vocab_size, embedding_dim), jnp.float32),
        "w_ih": s * jax.random.normal(ks[1], (3 * hidden_dim, embedding_dim), jnp.float32),
        "w_hh": s * jax.random.normal(ks[2], (3 * hidden_dim, hidden_dim), jnp.float32),
        "b_ih": s * jax.random.normal(ks[3], (3 * hidden_dim,), jnp.float32),
        "b_hh": s * jax.random.normal(ks[4], (3 * hidden_dim,), jnp.float32),
        "w_lin": s * jax.random.normal(ks[5], (2 * z_dim, hidden_dim), jnp.float32),
        "b_lin": s * jax.random.normal(ks[6], (2 * z_dim,), jnp.float32),
    }


if __name__ == "__main__":
    # Small shapes consistent with the module: batch=2, seq=8, embed=32, hidden=32, z=8.
    B, T, V, E, H, Z = 2, 8, 11, 32, 32, 8
    key = jax.random.PRNGKey(0)
    k_params, k_seq = jax.random.split(key)
    params = init_params(k_params, V, E, H, Z)

    seq = jax.random.randint(k_seq, (B, T), 0, V, dtype=jnp.int32)
    lengths = jnp.array([T, 5], dtype=jnp.int32)    # variable lengths

    mu_ref, lv_ref = text_encoder_reference(seq, lengths, params)

    # 1) f32 streaming, t_chunk=4 exercises the multi-chunk carried-hidden path.
    mu32, lv32 = text_encoder_forward(seq, lengths, params,
                                      t_chunk=4, stream_dtype=jnp.float32)
    mu32 = jax.block_until_ready(mu32)
    lv32 = jax.block_until_ready(lv32)
    assert mu32.shape == (B, Z) and lv32.shape == (B, Z)
    assert jnp.allclose(mu32, mu_ref, rtol=1e-2, atol=1e-2)
    assert jnp.allclose(lv32, lv_ref, rtol=1e-2, atol=1e-2)

    # 2) default bf16-streaming path (halved HBM traffic / VMEM), auto chunking.
    mu, logvar = text_encoder_forward(seq, lengths, params)
    mu = jax.block_until_ready(mu)
    logvar = jax.block_until_ready(logvar)
    assert mu.shape == (B, Z) and logvar.shape == (B, Z)
    assert jnp.allclose(mu, mu_ref, rtol=3e-2, atol=3e-2)
    assert jnp.allclose(logvar, lv_ref, rtol=3e-2, atol=3e-2)

    print("KERNEL_OK")
</pallas_src>

<mosaic_0001>
module attributes {stable_mosaic.version = 11 : i64} {
  func.func @gru_text_encoder_kernel(%arg0: i32, %arg1: i32, %arg2: memref<1xi32, #tpu.memory_space<smem>>, %arg3: memref<8x1xi32, #tpu.memory_space<vmem>>, %arg4: memref<4x8x96xf32, #tpu.memory_space<vmem>>, %arg5: memref<32x96xf32, #tpu.memory_space<vmem>>, %arg6: memref<1x32xf32, #tpu.memory_space<vmem>>, %arg7: memref<32x16xf32, #tpu.memory_space<vmem>>, %arg8: memref<1x16xf32, #tpu.memory_space<vmem>>, %arg9: memref<8x16xf32, #tpu.memory_space<vmem>>, %arg10: memref<8x32xf32, #tpu.memory_space<vmem>>) attributes {dimension_semantics = [#tpu.dimension_semantics<parallel>, #tpu.dimension_semantics<arbitrary>], iteration_bounds = array<i64: 1, 2>, scalar_prefetch = 1 : i64, scratch_operands = 1 : i64, tpu.core_type = #tpu.core_type<tc>, window_params = [{transform_indices = @transform_0, window_bounds = array<i64: 8, 1>}, {transform_indices = @transform_1, window_bounds = array<i64: 4, 8, 96>}, {pipeline_mode = #tpu.pipeline_mode<synchronous>, transform_indices = @transform_2, window_bounds = array<i64: 32, 96>}, {pipeline_mode = #tpu.pipeline_mode<synchronous>, transform_indices = @transform_3, window_bounds = array<i64: 1, 32>}, {pipeline_mode = #tpu.pipeline_mode<synchronous>, transform_indices = @transform_4, window_bounds = array<i64: 32, 16>}, {pipeline_mode = #tpu.pipeline_mode<synchronous>, transform_indices = @transform_5, window_bounds = array<i64: 1, 16>}, {transform_indices = @transform_6, window_bounds = array<i64: 8, 16>}]} {
    %c0_i32 = arith.constant 0 : i32
    %0 = arith.cmpi eq, %arg1, %c0_i32 : i32
    %1 = arith.extui %0 : i1 to i32
    %c0_i32_0 = arith.constant 0 : i32
    %2 = arith.cmpi ne, %1, %c0_i32_0 : i32
    scf.if %2 {
      %cst = arith.constant 0.000000e+00 : f32
      %14 = vector.broadcast %cst : f32 to vector<8x32xf32>
      %c0_9 = arith.constant 0 : index
      %c0_10 = arith.constant 0 : index
      %15 = vector.load %arg10[%c0_9, %c0_10] : memref<8x32xf32, #tpu.memory_space<vmem>>, vector<8x32xf32>
      tpu.vector_store %arg10[%c0_9, %c0_10], %14 {strides = array<i32>} : memref<8x32xf32, #tpu.memory_space<vmem>>, vector<8x32xf32>,
    } else {
    }
    %c0 = arith.constant 0 : index
    %3 = memref.load %arg2[%c0] : memref<1xi32, #tpu.memory_space<smem>>
    %c0_1 = arith.constant 0 : index
    %c0_2 = arith.constant 0 : index
    %4 = vector.load %arg3[%c0_1, %c0_2] : memref<8x1xi32, #tpu.memory_space<vmem>>, vector<8x1xi32>
    %c0_3 = arith.constant 0 : index
    %c0_4 = arith.constant 0 : index
    %5 = vector.load %arg5[%c0_3, %c0_4] : memref<32x96xf32, #tpu.memory_space<vmem>>, vector<32x96xf32>
    %c0_5 = arith.constant 0 : index
    %c0_6 = arith.constant 0 : index
    %6 = vector.load %arg6[%c0_5, %c0_6] : memref<1x32xf32, #tpu.memory_space<vmem>>, vector<1x32xf32>
    %c4_i32 = arith.constant 4 : i32
    %7 = arith.muli %arg1, %c4_i32 : i32
    %8 = arith.cmpi slt, %7, %3 : i32
    %9 = arith.extui %8 : i1 to i32
    %c0_i32_7 = arith.constant 0 : i32
    %10 = arith.cmpi ne, %9, %c0_i32_7 : i32
    scf.if %10 {
      %c4_i32_9 = arith.constant 4 : i32
      %14 = arith.muli %arg1, %c4_i32_9 : i32
      %c0_i32_10 = arith.constant 0 : i32
      %15 = arith.addi %14, %c0_i32_10 : i32
      %c0_11 = arith.constant 0 : index
      %c0_12 = arith.constant 0 : index
      %16 = vector.load %arg10[%c0_11, %c0_12] : memref<8x32xf32, #tpu.memory_space<vmem>>, vector<8x32xf32>
      %c0_13 = arith.constant 0 : index
      %c0_14 = arith.constant 0 : index
      %c0_15 = arith.constant 0 : index
      %17 = vector.load %arg4[%c0_13, %c0_14, %c0_15] : memref<4x8x96xf32, #tpu.memory_space<vmem>>, vector<1x8x96xf32>
      %18 = vector.shape_cast %17 : vector<1x8x96xf32> to vector<8x96xf32>
      %cst = arith.constant dense<0.000000e+00> : vector<8x96xf32>
      %19 = tpu.matmul %16, %5, %cst {dimension_numbers = #tpu.dot_dimension_numbers<[1], [0], [0], [1], [0, 0, 1, 1], [], []>} : vector<8x32xf32>, vector<32x96xf32>, vector<8x96xf32> -> vector<8x96xf32>
      %20 = vector.extract_strided_slice %18 {offsets = [0, 0], sizes = [8, 32], strides = [1, 1]} : vector<8x96xf32> to vector<8x32xf32>
      %21 = vector.extract_strided_slice %19 {offsets = [0, 0], sizes = [8, 32], strides = [1, 1]} : vector<8x96xf32> to vector<8x32xf32>
      %22 = arith.addf %20, %21 : vector<8x32xf32>
      %23 = arith.negf %22 : vector<8x32xf32>
      %24 = math.exp %23 : vector<8x32xf32>
      %cst_16 = arith.constant 1.000000e+00 : f32
      %25 = vector.broadcast %cst_16 : f32 to vector<8x32xf32>
      %26 = arith.addf %25, %24 : vector<8x32xf32>
      %27 = arith.divf %25, %26 : vector<8x32xf32>
      %28 = vector.extract_strided_slice %18 {offsets = [0, 32], sizes = [8, 32], strides = [1, 1]} : vector<8x96xf32> to vector<8x32xf32>
      %29 = vector.extract_strided_slice %19 {offsets = [0, 32], sizes = [8, 32], strides = [1, 1]} : vector<8x96xf32> to vector<8x32xf32>
      %30 = arith.addf %28, %29 : vector<8x32xf32>
      %31 = arith.negf %30 : vector<8x32xf32>
      %32 = math.exp %31 : vector<8x32xf32>
      %cst_17 = arith.constant 1.000000e+00 : f32
      %33 = vector.broadcast %cst_17 : f32 to vector<8x32xf32>
      %34 = arith.addf %33, %32 : vector<8x32xf32>
      %35 = arith.divf %33, %34 : vector<8x32xf32>
      %36 = vector.extract_strided_slice %18 {offsets = [0, 64], sizes = [8, 32], strides = [1, 1]} : vector<8x96xf32> to vector<8x32xf32>
      %37 = vector.extract_strided_slice %19 {offsets = [0, 64], sizes = [8, 32], strides = [1, 1]} : vector<8x96xf32> to vector<8x32xf32>
      %38 = vector.broadcast %6 : vector<1x32xf32> to vector<8x32xf32>
      %39 = arith.addf %37, %38 : vector<8x32xf32>
      %40 = arith.mulf %27, %39 : vector<8x32xf32>
      %41 = arith.addf %36, %40 : vector<8x32xf32>
      %42 = math.tanh %41 : vector<8x32xf32>
      %cst_18 = arith.constant 1.000000e+00 : f32
      %43 = vector.broadcast %cst_18 : f32 to vector<8x32xf32>
      %44 = arith.subf %43, %35 : vector<8x32xf32>
      %45 = arith.mulf %44, %42 : vector<8x32xf32>
      %46 = arith.mulf %35, %16 : vector<8x32xf32>
      %47 = arith.addf %45, %46 : vector<8x32xf32>
      %48 = vector.broadcast %15 : i32 to vector<8x1xi32>
      %49 = arith.cmpi slt, %48, %4 : vector<8x1xi32>
      %50 = vector.shape_cast %49 : vector<8x1xi1> to vector<8x1xi1>
      %51 = vector.broadcast %50 : vector<8x1xi1> to vector<8x32xi1>
      %52 = arith.select %51, %47, %16 : vector<8x32xi1>, vector<8x32xf32>
      %c0_19 = arith.constant 0 : index
      %c0_20 = arith.constant 0 : index
      %53 = vector.load %arg10[%c0_19, %c0_20] : memref<8x32xf32, #tpu.memory_space<vmem>>, vector<8x32xf32>
      tpu.vector_store %arg10[%c0_19, %c0_20], %52 {strides = array<i32>} : memref<8x32xf32, #tpu.memory_space<vmem>>, vector<8x32xf32>,
      %c4_i32_21 = arith.constant 4 : i32
      %54 = arith.muli %arg1, %c4_i32_21 : i32
      %c1_i32_22 = arith.constant 1 : i32
      %55 = arith.addi %54, %c1_i32_22 : i32
      %c0_23 = arith.constant 0 : index
      %c0_24 = arith.constant 0 : index
      %56 = vector.load %arg10[%c0_23, %c0_24] : memref<8x32xf32, #tpu.memory_space<vmem>>, vector<8x32xf32>
      %c1 = arith.constant 1 : index
      %c0_25 = arith.constant 0 : index
      %c0_26 = arith.constant 0 : index
      %57 = vector.load %arg4[%c1, %c0_25, %c0_26] : memref<4x8x96xf32, #tpu.memory_space<vmem>>, vector<1x8x96xf32>
      %58 = vector.shape_cast %57 : vector<1x8x96xf32> to vector<8x96xf32>
      %cst_27 = arith.constant dense<0.000000e+00> : vector<8x96xf32>
      %59 = tpu.matmul %56, %5, %cst_27 {dimension_numbers = #tpu.dot_dimension_numbers<[1], [0], [0], [1], [0, 0, 1, 1], [], []>} : vector<8x32xf32>, vector<32x96xf32>, vector<8x96xf32> -> vector<8x96xf32>
      %60 = vector.extract_strided_slice %58 {offsets = [0, 0], sizes = [8, 32], strides = [1, 1]} : vector<8x96xf32> to vector<8x32xf32>
      %61 = vector.extract_strided_slice %59 {offsets = [0, 0], sizes = [8, 32], strides = [1, 1]} : vector<8x96xf32> to vector<8x32xf32>
      %62 = arith.addf %60, %61 : vector<8x32xf32>
      %63 = arith.negf %62 : vector<8x32xf32>
      %64 = math.exp %63 : vector<8x32xf32>
      %cst_28 = arith.constant 1.000000e+00 : f32
      %65 = vector.broadcast %cst_28 : f32 to vector<8x32xf32>
      %66 = arith.addf %65, %64 : vector<8x32xf32>
      %67 = arith.divf %65, %66 : vector<8x32xf32>
      %68 = vector.extract_strided_slice %58 {offsets = [0, 32], sizes = [8, 32], strides = [1, 1]} : vector<8x96xf32> to vector<8x32xf32>
      %69 = vector.extract_strided_slice %59 {offsets = [0, 32], sizes = [8, 32], strides = [1, 1]} : vector<8x96xf32> to vector<8x32xf32>
      %70 = arith.addf %68, %69 : vector<8x32xf32>
      %71 = arith.negf %70 : vector<8x32xf32>
      %72 = math.exp %71 : vector<8x32xf32>
      %cst_29 = arith.constant 1.000000e+00 : f32
      %73 = vector.broadcast %cst_29 : f32 to vector<8x32xf32>
      %74 = arith.addf %73, %72 : vector<8x32xf32>
      %75 = arith.divf %73, %74 : vector<8x32xf32>
      %76 = vector.extract_strided_slice %58 {offsets = [0, 64], sizes = [8, 32], strides = [1, 1]} : vector<8x96xf32> to vector<8x32xf32>
      %77 = vector.extract_strided_slice %59 {offsets = [0, 64], sizes = [8, 32], strides = [1, 1]} : vector<8x96xf32> to vector<8x32xf32>
      %78 = vector.broadcast %6 : vector<1x32xf32> to vector<8x32xf32>
      %79 = arith.addf %77, %78 : vector<8x32xf32>
      %80 = arith.mulf %67, %79 : vector<8x32xf32>
      %81 = arith.addf %76, %80 : vector<8x32xf32>
      %82 = math.tanh %81 : vector<8x32xf32>
      %cst_30 = arith.constant 1.000000e+00 : f32
      %83 = vector.broadcast %cst_30 : f32 to vector<8x32xf32>
      %84 = arith.subf %83, %75 : vector<8x32xf32>
      %85 = arith.mulf %84, %82 : vector<8x32xf32>
      %86 = arith.mulf %75, %56 : vector<8x32xf32>
      %87 = arith.addf %85, %86 : vector<8x32xf32>
      %88 = vector.broadcast %55 : i32 to vector<8x1xi32>
      %89 = arith.cmpi slt, %88, %4 : vector<8x1xi32>
      %90 = vector.shape_cast %89 : vector<8x1xi1> to vector<8x1xi1>
      %91 = vector.broadcast %90 : vector<8x1xi1> to vector<8x32xi1>
      %92 = arith.select %91, %87, %56 : vector<8x32xi1>, vector<8x32xf32>
      %c0_31 = arith.constant 0 : index
      %c0_32 = arith.constant 0 : index
      %93 = vector.load %arg10[%c0_31, %c0_32] : memref<8x32xf32, #tpu.memory_space<vmem>>, vector<8x32xf32>
      tpu.vector_store %arg10[%c0_31, %c0_32], %92 {strides = array<i32>} : memref<8x32xf32, #tpu.memory_space<vmem>>, vector<8x32xf32>,
      %c4_i32_33 = arith.constant 4 : i32
      %94 = arith.muli %arg1, %c4_i32_33 : i32
      %c2_i32 = arith.constant 2 : i32
      %95 = arith.addi %94, %c2_i32 : i32
      %c0_34 = arith.constant 0 : index
      %c0_35 = arith.constant 0 : index
      %96 = vector.load %arg10[%c0_34, %c0_35] : memref<8x32xf32, #tpu.memory_space<vmem>>, vector<8x32xf32>
      %c2 = arith.constant 2 : index
      %c0_36 = arith.constant 0 : index
      %c0_37 = arith.constant 0 : index
      %97 = vector.load %arg4[%c2, %c0_36, %c0_37] : memref<4x8x96xf32, #tpu.memory_space<vmem>>, vector<1x8x96xf32>
      %98 = vector.shape_cast %97 : vector<1x8x96xf32> to vector<8x96xf32>
      %cst_38 = arith.constant dense<0.000000e+00> : vector<8x96xf32>
      %99 = tpu.matmul %96, %5, %cst_38 {dimension_numbers = #tpu.dot_dimension_numbers<[1], [0], [0], [1], [0, 0, 1, 1], [], []>} : vector<8x32xf32>, vector<32x96xf32>, vector<8x96xf32> -> vector<8x96xf32>
      %100 = vector.extract_strided_slice %98 {offsets = [0, 0], sizes = [8, 32], strides = [1, 1]} : vector<8x96xf32> to vector<8x32xf32>
      %101 = vector.extract_strided_slice %99 {offsets = [0, 0], sizes = [8, 32], strides = [1, 1]} : vector<8x96xf32> to vector<8x32xf32>
      %102 = arith.addf %100, %101 : vector<8x32xf32>
      %103 = arith.negf %102 : vector<8x32xf32>
      %104 = math.exp %103 : vector<8x32xf32>
      %cst_39 = arith.constant 1.000000e+00 : f32
      %105 = vector.broadcast %cst_39 : f32 to vector<8x32xf32>
      %106 = arith.addf %105, %104 : vector<8x32xf32>
      %107 = arith.divf %105, %106 : vector<8x32xf32>
      %108 = vector.extract_strided_slice %98 {offsets = [0, 32], sizes = [8, 32], strides = [1, 1]} : vector<8x96xf32> to vector<8x32xf32>
      %109 = vector.extract_strided_slice %99 {offsets = [0, 32], sizes = [8, 32], strides = [1, 1]} : vector<8x96xf32> to vector<8x32xf32>
      %110 = arith.addf %108, %109 : vector<8x32xf32>
      %111 = arith.negf %110 : vector<8x32xf32>
      %112 = math.exp %111 : vector<8x32xf32>
      %cst_40 = arith.constant 1.000000e+00 : f32
      %113 = vector.broadcast %cst_40 : f32 to vector<8x32xf32>
      %114 = arith.addf %113, %112 : vector<8x32xf32>
      %115 = arith.divf %113, %114 : vector<8x32xf32>
      %116 = vector.extract_strided_slice %98 {offsets = [0, 64], sizes = [8, 32], strides = [1, 1]} : vector<8x96xf32> to vector<8x32xf32>
      %117 = vector.extract_strided_slice %99 {offsets = [0, 64], sizes = [8, 32], strides = [1, 1]} : vector<8x96xf32> to vector<8x32xf32>
      %118 = vector.broadcast %6 : vector<1x32xf32> to vector<8x32xf32>
      %119 = arith.addf %117, %118 : vector<8x32xf32>
      %120 = arith.mulf %107, %119 : vector<8x32xf32>
      %121 = arith.addf %116, %120 : vector<8x32xf32>
      %122 = math.tanh %121 : vector<8x32xf32>
      %cst_41 = arith.constant 1.000000e+00 : f32
      %123 = vector.broadcast %cst_41 : f32 to vector<8x32xf32>
      %124 = arith.subf %123, %115 : vector<8x32xf32>
      %125 = arith.mulf %124, %122 : vector<8x32xf32>
      %126 = arith.mulf %115, %96 : vector<8x32xf32>
      %127 = arith.addf %125, %126 : vector<8x32xf32>
      %128 = vector.broadcast %95 : i32 to vector<8x1xi32>
      %129 = arith.cmpi slt, %128, %4 : vector<8x1xi32>
      %130 = vector.shape_cast %129 : vector<8x1xi1> to vector<8x1xi1>
      %131 = vector.broadcast %130 : vector<8x1xi1> to vector<8x32xi1>
      %132 = arith.select %131, %127, %96 : vector<8x32xi1>, vector<8x32xf32>
      %c0_42 = arith.constant 0 : index
      %c0_43 = arith.constant 0 : index
      %133 = vector.load %arg10[%c0_42, %c0_43] : memref<8x32xf32, #tpu.memory_space<vmem>>, vector<8x32xf32>
      tpu.vector_store %arg10[%c0_42, %c0_43], %132 {strides = array<i32>} : memref<8x32xf32, #tpu.memory_space<vmem>>, vector<8x32xf32>,
      %c4_i32_44 = arith.constant 4 : i32
      %134 = arith.muli %arg1, %c4_i32_44 : i32
      %c3_i32 = arith.constant 3 : i32
      %135 = arith.addi %134, %c3_i32 : i32
      %c0_45 = arith.constant 0 : index
      %c0_46 = arith.constant 0 : index
      %136 = vector.load %arg10[%c0_45, %c0_46] : memref<8x32xf32, #tpu.memory_space<vmem>>, vector<8x32xf32>
      %c3 = arith.constant 3 : index
      %c0_47 = arith.constant 0 : index
      %c0_48 = arith.constant 0 : index
      %137 = vector.load %arg4[%c3, %c0_47, %c0_48] : memref<4x8x96xf32, #tpu.memory_space<vmem>>, vector<1x8x96xf32>
      %138 = vector.shape_cast %137 : vector<1x8x96xf32> to vector<8x96xf32>
      %cst_49 = arith.constant dense<0.000000e+00> : vector<8x96xf32>
      %139 = tpu.matmul %136, %5, %cst_49 {dimension_numbers = #tpu.dot_dimension_numbers<[1], [0], [0], [1], [0, 0, 1, 1], [], []>} : vector<8x32xf32>, vector<32x96xf32>, vector<8x96xf32> -> vector<8x96xf32>
      %140 = vector.extract_strided_slice %138 {offsets = [0, 0], sizes = [8, 32], strides = [1, 1]} : vector<8x96xf32> to vector<8x32xf32>
      %141 = vector.extract_strided_slice %139 {offsets = [0, 0], sizes = [8, 32], strides = [1, 1]} : vector<8x96xf32> to vector<8x32xf32>
      %142 = arith.addf %140, %141 : vector<8x32xf32>
      %143 = arith.negf %142 : vector<8x32xf32>
      %144 = math.exp %143 : vector<8x32xf32>
      %cst_50 = arith.constant 1.000000e+00 : f32
      %145 = vector.broadcast %cst_50 : f32 to vector<8x32xf32>
      %146 = arith.addf %145, %144 : vector<8x32xf32>
      %147 = arith.divf %145, %146 : vector<8x32xf32>
      %148 = vector.extract_strided_slice %138 {offsets = [0, 32], sizes = [8, 32], strides = [1, 1]} : vector<8x96xf32> to vector<8x32xf32>
      %149 = vector.extract_strided_slice %139 {offsets = [0, 32], sizes = [8, 32], strides = [1, 1]} : vector<8x96xf32> to vector<8x32xf32>
      %150 = arith.addf %148, %149 : vector<8x32xf32>
      %151 = arith.negf %150 : vector<8x32xf32>
      %152 = math.exp %151 : vector<8x32xf32>
      %cst_51 = arith.constant 1.000000e+00 : f32
      %153 = vector.broadcast %cst_51 : f32 to vector<8x32xf32>
      %154 = arith.addf %153, %152 : vector<8x32xf32>
      %155 = arith.divf %153, %154 : vector<8x32xf32>
      %156 = vector.extract_strided_slice %138 {offsets = [0, 64], sizes = [8, 32], strides = [1, 1]} : vector<8x96xf32> to vector<8x32xf32>
      %157 = vector.extract_strided_slice %139 {offsets = [0, 64], sizes = [8, 32], strides = [1, 1]} : vector<8x96xf32> to vector<8x32xf32>
      %158 = vector.broadcast %6 : vector<1x32xf32> to vector<8x32xf32>
      %159 = arith.addf %157, %158 : vector<8x32xf32>
      %160 = arith.mulf %147, %159 : vector<8x32xf32>
      %161 = arith.addf %156, %160 : vector<8x32xf32>
      %162 = math.tanh %161 : vector<8x32xf32>
      %cst_52 = arith.constant 1.000000e+00 : f32
      %163 = vector.broadcast %cst_52 : f32 to vector<8x32xf32>
      %164 = arith.subf %163, %155 : vector<8x32xf32>
      %165 = arith.mulf %164, %162 : vector<8x32xf32>
      %166 = arith.mulf %155, %136 : vector<8x32xf32>
      %167 = arith.addf %165, %166 : vector<8x32xf32>
      %168 = vector.broadcast %135 : i32 to vector<8x1xi32>
      %169 = arith.cmpi slt, %168, %4 : vector<8x1xi32>
      %170 = vector.shape_cast %169 : vector<8x1xi1> to vector<8x1xi1>
      %171 = vector.broadcast %170 : vector<8x1xi1> to vector<8x32xi1>
      %172 = arith.select %171, %167, %136 : vector<8x32xi1>, vector<8x32xf32>
      %c0_53 = arith.constant 0 : index
      %c0_54 = arith.constant 0 : index
      %173 = vector.load %arg10[%c0_53, %c0_54] : memref<8x32xf32, #tpu.memory_space<vmem>>, vector<8x32xf32>
      tpu.vector_store %arg10[%c0_53, %c0_54], %172 {strides = array<i32>} : memref<8x32xf32, #tpu.memory_space<vmem>>, vector<8x32xf32>,
    } else {
    }
    %c1_i32 = arith.constant 1 : i32
    %11 = arith.cmpi eq, %arg1, %c1_i32 : i32
    %12 = arith.extui %11 : i1 to i32
    %c0_i32_8 = arith.constant 0 : i32
    %13 = arith.cmpi ne, %12, %c0_i32_8 : i32
    scf.if %13 {
      %c0_9 = arith.constant 0 : index
      %c0_10 = arith.constant 0 : index
      %14 = vector.load %arg10[%c0_9, %c0_10] : memref<8x32xf32, #tpu.memory_space<vmem>>, vector<8x32xf32>
      %c0_11 = arith.constant 0 : index
      %c0_12 = arith.constant 0 : index
      %15 = vector.load %arg7[%c0_11, %c0_12] : memref<32x16xf32, #tpu.memory_space<vmem>>, vector<32x16xf32>
      %cst = arith.constant dense<0.000000e+00> : vector<8x16xf32>
      %16 = tpu.matmul %14, %15, %cst {dimension_numbers = #tpu.dot_dimension_numbers<[1], [0], [0], [1], [0, 0, 1, 1], [], []>} : vector<8x32xf32>, vector<32x16xf32>, vector<8x16xf32> -> vector<8x16xf32>
      %c0_13 = arith.constant 0 : index
      %c0_14 = arith.constant 0 : index
      %17 = vector.load %arg8[%c0_13, %c0_14] : memref<1x16xf32, #tpu.memory_space<vmem>>, vector<1x16xf32>
      %18 = vector.broadcast %17 : vector<1x16xf32> to vector<8x16xf32>
      %19 = arith.addf %16, %18 : vector<8x16xf32>
      %c0_15 = arith.constant 0 : index
      %c0_16 = arith.constant 0 : index
      %20 = vector.load %arg9[%c0_15, %c0_16] : memref<8x16xf32, #tpu.memory_space<vmem>>, vector<8x16xf32>
      tpu.vector_store %arg9[%c0_15, %c0_16], %19 {strides = array<i32>} : memref<8x16xf32, #tpu.memory_space<vmem>>, vector<8x16xf32>,
    } else {
    }
    return
  }
  func.func @transform_0(%arg0: i32, %arg1: i32, %arg2: memref<1xi32, #tpu.memory_space<smem>>) -> (i32, i32) {
    %c0_i32 = arith.constant 0 : i32
    %c0_i32_0 = arith.constant 0 : i32
    return %arg0, %c0_i32 : i32, i32
  }
  func.func @transform_1(%arg0: i32, %arg1: i32, %arg2: memref<1xi32, #tpu.memory_space<smem>>) -> (i32, i32, i32) {
    %c0_i32 = arith.constant 0 : i32
    %c0_i32_0 = arith.constant 0 : i32
    return %arg1, %arg0, %c0_i32 : i32, i32, i32
  }
  func.func @transform_2(%arg0: i32, %arg1: i32, %arg2: memref<1xi32, #tpu.memory_space<smem>>) -> (i32, i32) {
    %c0_i32 = arith.constant 0 : i32
    %c0_i32_0 = arith.constant 0 : i32
    %c0_i32_1 = arith.constant 0 : i32
    return %c0_i32, %c0_i32_0 : i32, i32
  }
  func.func @transform_3(%arg0: i32, %arg1: i32, %arg2: memref<1xi32, #tpu.memory_space<smem>>) -> (i32, i32) {
    %c0_i32 = arith.constant 0 : i32
    %c0_i32_0 = arith.constant 0 : i32
    %c0_i32_1 = arith.constant 0 : i32
    return %c0_i32, %c0_i32_0 : i32, i32
  }
  func.func @transform_4(%arg0: i32, %arg1: i32, %arg2: memref<1xi32, #tpu.memory_space<smem>>) -> (i32, i32) {
    %c0_i32 = arith.constant 0 : i32
    %c0_i32_0 = arith.constant 0 : i32
    %c0_i32_1 = arith.constant 0 : i32
    return %c0_i32, %c0_i32_0 : i32, i32
  }
  func.func @transform_5(%arg0: i32, %arg1: i32, %arg2: memref<1xi32, #tpu.memory_space<smem>>) -> (i32, i32) {
    %c0_i32 = arith.constant 0 : i32
    %c0_i32_0 = arith.constant 0 : i32
    %c0_i32_1 = arith.constant 0 : i32
    return %c0_i32, %c0_i32_0 : i32, i32
  }
  func.func @transform_6(%arg0: i32, %arg1: i32, %arg2: memref<1xi32, #tpu.memory_space<smem>>) -> (i32, i32) {
    %c0_i32 = arith.constant 0 : i32
    %c0_i32_0 = arith.constant 0 : i32
    return %arg0, %c0_i32 : i32, i32
  }
}

module attributes {stable_mosaic.version = 11 : i64} {
  func.func @gru_text_encoder_kernel(%arg0: i32, %arg1: i32, %arg2: memref<1xi32, #tpu.memory_space<smem>>, %arg3: memref<8x1xi32, #tpu.memory_space<vmem>>, %arg4: memref<4x8x96xf32, #tpu.memory_space<vmem>>, %arg5: memref<32x96xf32, #tpu.memory_space<vmem>>, %arg6: memref<1x32xf32, #tpu.memory_space<vmem>>, %arg7: memref<32x16xf32, #tpu.memory_space<vmem>>, %arg8: memref<1x16xf32, #tpu.memory_space<vmem>>, %arg9: memref<8x16xf32, #tpu.memory_space<vmem>>, %arg10: memref<8x32xf32, #tpu.memory_space<vmem>>) attributes {dimension_semantics = [#tpu.dimension_semantics<parallel>, #tpu.dimension_semantics<arbitrary>], iteration_bounds = array<i64: 1, 2>, scalar_prefetch = 1 : i64, scratch_operands = 1 : i64, tpu.core_type = #tpu.core_type<tc>, window_params = [{transform_indices = @transform_0, window_bounds = array<i64: 8, 1>}, {transform_indices = @transform_1, window_bounds = array<i64: 4, 8, 96>}, {pipeline_mode = #tpu.pipeline_mode<synchronous>, transform_indices = @transform_2, window_bounds = array<i64: 32, 96>}, {pipeline_mode = #tpu.pipeline_mode<synchronous>, transform_indices = @transform_3, window_bounds = array<i64: 1, 32>}, {pipeline_mode = #tpu.pipeline_mode<synchronous>, transform_indices = @transform_4, window_bounds = array<i64: 32, 16>}, {pipeline_mode = #tpu.pipeline_mode<synchronous>, transform_indices = @transform_5, window_bounds = array<i64: 1, 16>}, {transform_indices = @transform_6, window_bounds = array<i64: 8, 16>}]} {
    %c0_i32 = arith.constant 0 : i32
    %0 = arith.cmpi eq, %arg1, %c0_i32 : i32
    %1 = arith.extui %0 : i1 to i32
    %c0_i32_0 = arith.constant 0 : i32
    %2 = arith.cmpi ne, %1, %c0_i32_0 : i32
    scf.if %2 {
      %cst = arith.constant 0.000000e+00 : f32
      %14 = vector.broadcast %cst : f32 to vector<8x32xf32>
      %c0_9 = arith.constant 0 : index
      %c0_10 = arith.constant 0 : index
      %15 = vector.load %arg10[%c0_9, %c0_10] : memref<8x32xf32, #tpu.memory_space<vmem>>, vector<8x32xf32>
      tpu.vector_store %arg10[%c0_9, %c0_10], %14 {strides = array<i32>} : memref<8x32xf32, #tpu.memory_space<vmem>>, vector<8x32xf32>,
    } else {
    }
    %c0 = arith.constant 0 : index
    %3 = memref.load %arg2[%c0] : memref<1xi32, #tpu.memory_space<smem>>
    %c0_1 = arith.constant 0 : index
    %c0_2 = arith.constant 0 : index
    %4 = vector.load %arg3[%c0_1, %c0_2] : memref<8x1xi32, #tpu.memory_space<vmem>>, vector<8x1xi32>
    %c0_3 = arith.constant 0 : index
    %c0_4 = arith.constant 0 : index
    %5 = vector.load %arg5[%c0_3, %c0_4] : memref<32x96xf32, #tpu.memory_space<vmem>>, vector<32x96xf32>
    %c0_5 = arith.constant 0 : index
    %c0_6 = arith.constant 0 : index
    %6 = vector.load %arg6[%c0_5, %c0_6] : memref<1x32xf32, #tpu.memory_space<vmem>>, vector<1x32xf32>
    %c4_i32 = arith.constant 4 : i32
    %7 = arith.muli %arg1, %c4_i32 : i32
    %8 = arith.cmpi slt, %7, %3 : i32
    %9 = arith.extui %8 : i1 to i32
    %c0_i32_7 = arith.constant 0 : i32
    %10 = arith.cmpi ne, %9, %c0_i32_7 : i32
    scf.if %10 {
      %c4_i32_9 = arith.constant 4 : i32
      %14 = arith.muli %arg1, %c4_i32_9 : i32
      %c0_i32_10 = arith.constant 0 : i32
      %15 = arith.addi %14, %c0_i32_10 : i32
      %c0_11 = arith.constant 0 : index
      %c0_12 = arith.constant 0 : index
      %16 = vector.load %arg10[%c0_11, %c0_12] : memref<8x32xf32, #tpu.memory_space<vmem>>, vector<8x32xf32>
      %c0_13 = arith.constant 0 : index
      %c0_14 = arith.constant 0 : index
      %c0_15 = arith.constant 0 : index
      %17 = vector.load %arg4[%c0_13, %c0_14, %c0_15] : memref<4x8x96xf32, #tpu.memory_space<vmem>>, vector<1x8x96xf32>
      %18 = vector.shape_cast %17 : vector<1x8x96xf32> to vector<8x96xf32>
      %cst = arith.constant dense<0.000000e+00> : vector<8x96xf32>
      %19 = tpu.matmul %16, %5, %cst {dimension_numbers = #tpu.dot_dimension_numbers<[1], [0], [0], [1], [0, 0, 1, 1], [], []>} : vector<8x32xf32>, vector<32x96xf32>, vector<8x96xf32> -> vector<8x96xf32>
      %20 = vector.extract_strided_slice %18 {offsets = [0, 0], sizes = [8, 32], strides = [1, 1]} : vector<8x96xf32> to vector<8x32xf32>
      %21 = vector.extract_strided_slice %19 {offsets = [0, 0], sizes = [8, 32], strides = [1, 1]} : vector<8x96xf32> to vector<8x32xf32>
      %22 = arith.addf %20, %21 : vector<8x32xf32>
      %23 = arith.negf %22 : vector<8x32xf32>
      %24 = math.exp %23 : vector<8x32xf32>
      %cst_16 = arith.constant 1.000000e+00 : f32
      %25 = vector.broadcast %cst_16 : f32 to vector<8x32xf32>
      %26 = arith.addf %25, %24 : vector<8x32xf32>
      %27 = arith.divf %25, %26 : vector<8x32xf32>
      %28 = vector.extract_strided_slice %18 {offsets = [0, 32], sizes = [8, 32], strides = [1, 1]} : vector<8x96xf32> to vector<8x32xf32>
      %29 = vector.extract_strided_slice %19 {offsets = [0, 32], sizes = [8, 32], strides = [1, 1]} : vector<8x96xf32> to vector<8x32xf32>
      %30 = arith.addf %28, %29 : vector<8x32xf32>
      %31 = arith.negf %30 : vector<8x32xf32>
      %32 = math.exp %31 : vector<8x32xf32>
      %cst_17 = arith.constant 1.000000e+00 : f32
      %33 = vector.broadcast %cst_17 : f32 to vector<8x32xf32>
      %34 = arith.addf %33, %32 : vector<8x32xf32>
      %35 = arith.divf %33, %34 : vector<8x32xf32>
      %36 = vector.extract_strided_slice %18 {offsets = [0, 64], sizes = [8, 32], strides = [1, 1]} : vector<8x96xf32> to vector<8x32xf32>
      %37 = vector.extract_strided_slice %19 {offsets = [0, 64], sizes = [8, 32], strides = [1, 1]} : vector<8x96xf32> to vector<8x32xf32>
      %38 = vector.broadcast %6 : vector<1x32xf32> to vector<8x32xf32>
      %39 = arith.addf %37, %38 : vector<8x32xf32>
      %40 = arith.mulf %27, %39 : vector<8x32xf32>
      %41 = arith.addf %36, %40 : vector<8x32xf32>
      %42 = math.tanh %41 : vector<8x32xf32>
      %cst_18 = arith.constant 1.000000e+00 : f32
      %43 = vector.broadcast %cst_18 : f32 to vector<8x32xf32>
      %44 = arith.subf %43, %35 : vector<8x32xf32>
      %45 = arith.mulf %44, %42 : vector<8x32xf32>
      %46 = arith.mulf %35, %16 : vector<8x32xf32>
      %47 = arith.addf %45, %46 : vector<8x32xf32>
      %48 = vector.broadcast %15 : i32 to vector<8x1xi32>
      %49 = arith.cmpi slt, %48, %4 : vector<8x1xi32>
      %50 = vector.shape_cast %49 : vector<8x1xi1> to vector<8x1xi1>
      %51 = vector.broadcast %50 : vector<8x1xi1> to vector<8x32xi1>
      %52 = arith.select %51, %47, %16 : vector<8x32xi1>, vector<8x32xf32>
      %c0_19 = arith.constant 0 : index
      %c0_20 = arith.constant 0 : index
      %53 = vector.load %arg10[%c0_19, %c0_20] : memref<8x32xf32, #tpu.memory_space<vmem>>, vector<8x32xf32>
      tpu.vector_store %arg10[%c0_19, %c0_20], %52 {strides = array<i32>} : memref<8x32xf32, #tpu.memory_space<vmem>>, vector<8x32xf32>,
      %c4_i32_21 = arith.constant 4 : i32
      %54 = arith.muli %arg1, %c4_i32_21 : i32
      %c1_i32_22 = arith.constant 1 : i32
      %55 = arith.addi %54, %c1_i32_22 : i32
      %c0_23 = arith.constant 0 : index
      %c0_24 = arith.constant 0 : index
      %56 = vector.load %arg10[%c0_23, %c0_24] : memref<8x32xf32, #tpu.memory_space<vmem>>, vector<8x32xf32>
      %c1 = arith.constant 1 : index
      %c0_25 = arith.constant 0 : index
      %c0_26 = arith.constant 0 : index
      %57 = vector.load %arg4[%c1, %c0_25, %c0_26] : memref<4x8x96xf32, #tpu.memory_space<vmem>>, vector<1x8x96xf32>
      %58 = vector.shape_cast %57 : vector<1x8x96xf32> to vector<8x96xf32>
      %cst_27 = arith.constant dense<0.000000e+00> : vector<8x96xf32>
      %59 = tpu.matmul %56, %5, %cst_27 {dimension_numbers = #tpu.dot_dimension_numbers<[1], [0], [0], [1], [0, 0, 1, 1], [], []>} : vector<8x32xf32>, vector<32x96xf32>, vector<8x96xf32> -> vector<8x96xf32>
      %60 = vector.extract_strided_slice %58 {offsets = [0, 0], sizes = [8, 32], strides = [1, 1]} : vector<8x96xf32> to vector<8x32xf32>
      %61 = vector.extract_strided_slice %59 {offsets = [0, 0], sizes = [8, 32], strides = [1, 1]} : vector<8x96xf32> to vector<8x32xf32>
      %62 = arith.addf %60, %61 : vector<8x32xf32>
      %63 = arith.negf %62 : vector<8x32xf32>
      %64 = math.exp %63 : vector<8x32xf32>
      %cst_28 = arith.constant 1.000000e+00 : f32
      %65 = vector.broadcast %cst_28 : f32 to vector<8x32xf32>
      %66 = arith.addf %65, %64 : vector<8x32xf32>
      %67 = arith.divf %65, %66 : vector<8x32xf32>
      %68 = vector.extract_strided_slice %58 {offsets = [0, 32], sizes = [8, 32], strides = [1, 1]} : vector<8x96xf32> to vector<8x32xf32>
      %69 = vector.extract_strided_slice %59 {offsets = [0, 32], sizes = [8, 32], strides = [1, 1]} : vector<8x96xf32> to vector<8x32xf32>
      %70 = arith.addf %68, %69 : vector<8x32xf32>
      %71 = arith.negf %70 : vector<8x32xf32>
      %72 = math.exp %71 : vector<8x32xf32>
      %cst_29 = arith.constant 1.000000e+00 : f32
      %73 = vector.broadcast %cst_29 : f32 to vector<8x32xf32>
      %74 = arith.addf %73, %72 : vector<8x32xf32>
      %75 = arith.divf %73, %74 : vector<8x32xf32>
      %76 = vector.extract_strided_slice %58 {offsets = [0, 64], sizes = [8, 32], strides = [1, 1]} : vector<8x96xf32> to vector<8x32xf32>
      %77 = vector.extract_strided_slice %59 {offsets = [0, 64], sizes = [8, 32], strides = [1, 1]} : vector<8x96xf32> to vector<8x32xf32>
      %78 = vector.broadcast %6 : vector<1x32xf32> to vector<8x32xf32>
      %79 = arith.addf %77, %78 : vector<8x32xf32>
      %80 = arith.mulf %67, %79 : vector<8x32xf32>
      %81 = arith.addf %76, %80 : vector<8x32xf32>
      %82 = math.tanh %81 : vector<8x32xf32>
      %cst_30 = arith.constant 1.000000e+00 : f32
      %83 = vector.broadcast %cst_30 : f32 to vector<8x32xf32>
      %84 = arith.subf %83, %75 : vector<8x32xf32>
      %85 = arith.mulf %84, %82 : vector<8x32xf32>
      %86 = arith.mulf %75, %56 : vector<8x32xf32>
      %87 = arith.addf %85, %86 : vector<8x32xf32>
      %88 = vector.broadcast %55 : i32 to vector<8x1xi32>
      %89 = arith.cmpi slt, %88, %4 : vector<8x1xi32>
      %90 = vector.shape_cast %89 : vector<8x1xi1> to vector<8x1xi1>
      %91 = vector.broadcast %90 : vector<8x1xi1> to vector<8x32xi1>
      %92 = arith.select %91, %87, %56 : vector<8x32xi1>, vector<8x32xf32>
      %c0_31 = arith.constant 0 : index
      %c0_32 = arith.constant 0 : index
      %93 = vector.load %arg10[%c0_31, %c0_32] : memref<8x32xf32, #tpu.memory_space<vmem>>, vector<8x32xf32>
      tpu.vector_store %arg10[%c0_31, %c0_32], %92 {strides = array<i32>} : memref<8x32xf32, #tpu.memory_space<vmem>>, vector<8x32xf32>,
      %c4_i32_33 = arith.constant 4 : i32
      %94 = arith.muli %arg1, %c4_i32_33 : i32
      %c2_i32 = arith.constant 2 : i32
      %95 = arith.addi %94, %c2_i32 : i32
      %c0_34 = arith.constant 0 : index
      %c0_35 = arith.constant 0 : index
      %96 = vector.load %arg10[%c0_34, %c0_35] : memref<8x32xf32, #tpu.memory_space<vmem>>, vector<8x32xf32>
      %c2 = arith.constant 2 : index
      %c0_36 = arith.constant 0 : index
      %c0_37 = arith.constant 0 : index
      %97 = vector.load %arg4[%c2, %c0_36, %c0_37] : memref<4x8x96xf32, #tpu.memory_space<vmem>>, vector<1x8x96xf32>
      %98 = vector.shape_cast %97 : vector<1x8x96xf32> to vector<8x96xf32>
      %cst_38 = arith.constant dense<0.000000e+00> : vector<8x96xf32>
      %99 = tpu.matmul %96, %5, %cst_38 {dimension_numbers = #tpu.dot_dimension_numbers<[1], [0], [0], [1], [0, 0, 1, 1], [], []>} : vector<8x32xf32>, vector<32x96xf32>, vector<8x96xf32> -> vector<8x96xf32>
      %100 = vector.extract_strided_slice %98 {offsets = [0, 0], sizes = [8, 32], strides = [1, 1]} : vector<8x96xf32> to vector<8x32xf32>
      %101 = vector.extract_strided_slice %99 {offsets = [0, 0], sizes = [8, 32], strides = [1, 1]} : vector<8x96xf32> to vector<8x32xf32>
      %102 = arith.addf %100, %101 : vector<8x32xf32>
      %103 = arith.negf %102 : vector<8x32xf32>
      %104 = math.exp %103 : vector<8x32xf32>
      %cst_39 = arith.constant 1.000000e+00 : f32
      %105 = vector.broadcast %cst_39 : f32 to vector<8x32xf32>
      %106 = arith.addf %105, %104 : vector<8x32xf32>
      %107 = arith.divf %105, %106 : vector<8x32xf32>
      %108 = vector.extract_strided_slice %98 {offsets = [0, 32], sizes = [8, 32], strides = [1, 1]} : vector<8x96xf32> to vector<8x32xf32>
      %109 = vector.extract_strided_slice %99 {offsets = [0, 32], sizes = [8, 32], strides = [1, 1]} : vector<8x96xf32> to vector<8x32xf32>
      %110 = arith.addf %108, %109 : vector<8x32xf32>
      %111 = arith.negf %110 : vector<8x32xf32>
      %112 = math.exp %111 : vector<8x32xf32>
      %cst_40 = arith.constant 1.000000e+00 : f32
      %113 = vector.broadcast %cst_40 : f32 to vector<8x32xf32>
      %114 = arith.addf %113, %112 : vector<8x32xf32>
      %115 = arith.divf %113, %114 : vector<8x32xf32>
      %116 = vector.extract_strided_slice %98 {offsets = [0, 64], sizes = [8, 32], strides = [1, 1]} : vector<8x96xf32> to vector<8x32xf32>
      %117 = vector.extract_strided_slice %99 {offsets = [0, 64], sizes = [8, 32], strides = [1, 1]} : vector<8x96xf32> to vector<8x32xf32>
      %118 = vector.broadcast %6 : vector<1x32xf32> to vector<8x32xf32>
      %119 = arith.addf %117, %118 : vector<8x32xf32>
      %120 = arith.mulf %107, %119 : vector<8x32xf32>
      %121 = arith.addf %116, %120 : vector<8x32xf32>
      %122 = math.tanh %121 : vector<8x32xf32>
      %cst_41 = arith.constant 1.000000e+00 : f32
      %123 = vector.broadcast %cst_41 : f32 to vector<8x32xf32>
      %124 = arith.subf %123, %115 : vector<8x32xf32>
      %125 = arith.mulf %124, %122 : vector<8x32xf32>
      %126 = arith.mulf %115, %96 : vector<8x32xf32>
      %127 = arith.addf %125, %126 : vector<8x32xf32>
      %128 = vector.broadcast %95 : i32 to vector<8x1xi32>
      %129 = arith.cmpi slt, %128, %4 : vector<8x1xi32>
      %130 = vector.shape_cast %129 : vector<8x1xi1> to vector<8x1xi1>
      %131 = vector.broadcast %130 : vector<8x1xi1> to vector<8x32xi1>
      %132 = arith.select %131, %127, %96 : vector<8x32xi1>, vector<8x32xf32>
      %c0_42 = arith.constant 0 : index
      %c0_43 = arith.constant 0 : index
      %133 = vector.load %arg10[%c0_42, %c0_43] : memref<8x32xf32, #tpu.memory_space<vmem>>, vector<8x32xf32>
      tpu.vector_store %arg10[%c0_42, %c0_43], %132 {strides = array<i32>} : memref<8x32xf32, #tpu.memory_space<vmem>>, vector<8x32xf32>,
      %c4_i32_44 = arith.constant 4 : i32
      %134 = arith.muli %arg1, %c4_i32_44 : i32
      %c3_i32 = arith.constant 3 : i32
      %135 = arith.addi %134, %c3_i32 : i32
      %c0_45 = arith.constant 0 : index
      %c0_46 = arith.constant 0 : index
      %136 = vector.load %arg10[%c0_45, %c0_46] : memref<8x32xf32, #tpu.memory_space<vmem>>, vector<8x32xf32>
      %c3 = arith.constant 3 : index
      %c0_47 = arith.constant 0 : index
      %c0_48 = arith.constant 0 : index
      %137 = vector.load %arg4[%c3, %c0_47, %c0_48] : memref<4x8x96xf32, #tpu.memory_space<vmem>>, vector<1x8x96xf32>
      %138 = vector.shape_cast %137 : vector<1x8x96xf32> to vector<8x96xf32>
      %cst_49 = arith.constant dense<0.000000e+00> : vector<8x96xf32>
      %139 = tpu.matmul %136, %5, %cst_49 {dimension_numbers = #tpu.dot_dimension_numbers<[1], [0], [0], [1], [0, 0, 1, 1], [], []>} : vector<8x32xf32>, vector<32x96xf32>, vector<8x96xf32> -> vector<8x96xf32>
      %140 = vector.extract_strided_slice %138 {offsets = [0, 0], sizes = [8, 32], strides = [1, 1]} : vector<8x96xf32> to vector<8x32xf32>
      %141 = vector.extract_strided_slice %139 {offsets = [0, 0], sizes = [8, 32], strides = [1, 1]} : vector<8x96xf32> to vector<8x32xf32>
      %142 = arith.addf %140, %141 : vector<8x32xf32>
      %143 = arith.negf %142 : vector<8x32xf32>
      %144 = math.exp %143 : vector<8x32xf32>
      %cst_50 = arith.constant 1.000000e+00 : f32
      %145 = vector.broadcast %cst_50 : f32 to vector<8x32xf32>
      %146 = arith.addf %145, %144 : vector<8x32xf32>
      %147 = arith.divf %145, %146 : vector<8x32xf32>
      %148 = vector.extract_strided_slice %138 {offsets = [0, 32], sizes = [8, 32], strides = [1, 1]} : vector<8x96xf32> to vector<8x32xf32>
      %149 = vector.extract_strided_slice %139 {offsets = [0, 32], sizes = [8, 32], strides = [1, 1]} : vector<8x96xf32> to vector<8x32xf32>
      %150 = arith.addf %148, %149 : vector<8x32xf32>
      %151 = arith.negf %150 : vector<8x32xf32>
      %152 = math.exp %151 : vector<8x32xf32>
      %cst_51 = arith.constant 1.000000e+00 : f32
      %153 = vector.broadcast %cst_51 : f32 to vector<8x32xf32>
      %154 = arith.addf %153, %152 : vector<8x32xf32>
      %155 = arith.divf %153, %154 : vector<8x32xf32>
      %156 = vector.extract_strided_slice %138 {offsets = [0, 64], sizes = [8, 32], strides = [1, 1]} : vector<8x96xf32> to vector<8x32xf32>
      %157 = vector.extract_strided_slice %139 {offsets = [0, 64], sizes = [8, 32], strides = [1, 1]} : vector<8x96xf32> to vector<8x32xf32>
      %158 = vector.broadcast %6 : vector<1x32xf32> to vector<8x32xf32>
      %159 = arith.addf %157, %158 : vector<8x32xf32>
      %160 = arith.mulf %147, %159 : vector<8x32xf32>
      %161 = arith.addf %156, %160 : vector<8x32xf32>
      %162 = math.tanh %161 : vector<8x32xf32>
      %cst_52 = arith.constant 1.000000e+00 : f32
      %163 = vector.broadcast %cst_52 : f32 to vector<8x32xf32>
      %164 = arith.subf %163, %155 : vector<8x32xf32>
      %165 = arith.mulf %164, %162 : vector<8x32xf32>
      %166 = arith.mulf %155, %136 : vector<8x32xf32>
      %167 = arith.addf %165, %166 : vector<8x32xf32>
      %168 = vector.broadcast %135 : i32 to vector<8x1xi32>
      %169 = arith.cmpi slt, %168, %4 : vector<8x1xi32>
      %170 = vector.shape_cast %169 : vector<8x1xi1> to vector<8x1xi1>
      %171 = vector.broadcast %170 : vector<8x1xi1> to vector<8x32xi1>
      %172 = arith.select %171, %167, %136 : vector<8x32xi1>, vector<8x32xf32>
      %c0_53 = arith.constant 0 : index
      %c0_54 = arith.constant 0 : index
      %173 = vector.load %arg10[%c0_53, %c0_54] : memref<8x32xf32, #tpu.memory_space<vmem>>, vector<8x32xf32>
      tpu.vector_store %arg10[%c0_53, %c0_54], %172 {strides = array<i32>} : memref<8x32xf32, #tpu.memory_space<vmem>>, vector<8x32xf32>,
    } else {
    }
    %c1_i32 = arith.constant 1 : i32
    %11 = arith.cmpi eq, %arg1, %c1_i32 : i32
    %12 = arith.extui %11 : i1 to i32
    %c0_i32_8 = arith.constant 0 : i32
    %13 = arith.cmpi ne, %12, %c0_i32_8 : i32
    scf.if %13 {
      %c0_9 = arith.constant 0 : index
      %c0_10 = arith.constant 0 : index
      %14 = vector.load %arg10[%c0_9, %c0_10] : memref<8x32xf32, #tpu.memory_space<vmem>>, vector<8x32xf32>
      %c0_11 = arith.constant 0 : index
      %c0_12 = arith.constant 0 : index
      %15 = vector.load %arg7[%c0_11, %c0_12] : memref<32x16xf32, #tpu.memory_space<vmem>>, vector<32x16xf32>
      %cst = arith.constant dense<0.000000e+00> : vector<8x16xf32>
      %16 = tpu.matmul %14, %15, %cst {dimension_numbers = #tpu.dot_dimension_numbers<[1], [0], [0], [1], [0, 0, 1, 1], [], []>} : vector<8x32xf32>, vector<32x16xf32>, vector<8x16xf32> -> vector<8x16xf32>
      %c0_13 = arith.constant 0 : index
      %c0_14 = arith.constant 0 : index
      %17 = vector.load %arg8[%c0_13, %c0_14] : memref<1x16xf32, #tpu.memory_space<vmem>>, vector<1x16xf32>
      %18 = vector.broadcast %17 : vector<1x16xf32> to vector<8x16xf32>
      %19 = arith.addf %16, %18 : vector<8x16xf32>
      %c0_15 = arith.constant 0 : index
      %c0_16 = arith.constant 0 : index
      %20 = vector.load %arg9[%c0_15, %c0_16] : memref<8x16xf32, #tpu.memory_space<vmem>>, vector<8x16xf32>
      tpu.vector_store %arg9[%c0_15, %c0_16], %19 {strides = array<i32>} : memref<8x16xf32, #tpu.memory_space<vmem>>, vector<8x16xf32>,
    } else {
    }
    return
  }
  func.func @transform_0(%arg0: i32, %arg1: i32, %arg2: memref<1xi32, #tpu.memory_space<smem>>) -> (i32, i32) {
    %c0_i32 = arith.constant 0 : i32
    %c0_i32_0 = arith.constant 0 : i32
    return %arg0, %c0_i32 : i32, i32
  }
  func.func @transform_1(%arg0: i32, %arg1: i32, %arg2: memref<1xi32, #tpu.memory_space<smem>>) -> (i32, i32, i32) {
    %c0_i32 = arith.constant 0 : i32
    %c0_i32_0 = arith.constant 0 : i32
    return %arg1, %arg0, %c0_i32 : i32, i32, i32
  }
  func.func @transform_2(%arg0: i32, %arg1: i32, %arg2: memref<1xi32, #tpu.memory_space<smem>>) -> (i32, i32) {
    %c0_i32 = arith.constant 0 : i32
    %c0_i32_0 = arith.constant 0 : i32
    %c0_i32_1 = arith.constant 0 : i32
    return %c0_i32, %c0_i32_0 : i32, i32
  }
  func.func @transform_3(%arg0: i32, %arg1: i32, %arg2: memref<1xi32, #tpu.memory_space<smem>>) -> (i32, i32) {
    %c0_i32 = arith.constant 0 : i32
    %c0_i32_0 = arith.constant 0 : i32
    %c0_i32_1 = arith.constant 0 : i32
    return %c0_i32, %c0_i32_0 : i32, i32
  }
  func.func @transform_4(%arg0: i32, %arg1: i32, %arg2: memref<1xi32, #tpu.memory_space<smem>>) -> (i32, i32) {
    %c0_i32 = arith.constant 0 : i32
    %c0_i32_0 = arith.constant 0 : i32
    %c0_i32_1 = arith.constant 0 : i32
    return %c0_i32, %c0_i32_0 : i32, i32
  }
  func.func @transform_5(%arg0: i32, %arg1: i32, %arg2: memref<1xi32, #tpu.memory_space<smem>>) -> (i32, i32) {
    %c0_i32 = arith.constant 0 : i32
    %c0_i32_0 = arith.constant 0 : i32
    %c0_i32_1 = arith.constant 0 : i32
    return %c0_i32, %c0_i32_0 : i32, i32
  }
  func.func @transform_6(%arg0: i32, %arg1: i32, %arg2: memref<1xi32, #tpu.memory_space<smem>>) -> (i32, i32) {
    %c0_i32 = arith.constant 0 : i32
    %c0_i32_0 = arith.constant 0 : i32
    return %arg0, %c0_i32 : i32, i32
  }
}

</mosaic_0001>

<bundles_post_ra>
// kernel: tpu_custom_call.1
= control target key start
LH: loop header
LB: loop body
LE: loop exit
PB: predicated region body
PF: predicated region fallthrough
CT: control target
= control target key end

     0   :  { %s1611_s0 = inlined_call_operand.<no memory space> [shape: s32[1], index: 0, kind: input, shape index: {}]   ;;  %s1612_s1 = inlined_call_operand.vmem [shape: s32[8,1], index: 1, kind: input, shape index: {}]   ;;  %s1613_s2 = inlined_call_operand.hbm [shape: f32[8,8,96], index: 2, kind: input, shape index: {}]   ;;  %s1614_s3 = inlined_call_operand.vmem [shape: f32[32,96], index: 3, kind: input, shape index: {}]   ;;  %s1615_s4 = inlined_call_operand.vmem [shape: f32[1,32], index: 4, kind: input, shape index: {}]   ;;  %s1616_s5 = inlined_call_operand.vmem [shape: f32[32,16], index: 5, kind: input, shape index: {}]   ;;  %s1617_s6 = inlined_call_operand.vmem [shape: f32[1,16], index: 6, kind: input, shape index: {}]   ;;  %s1618_s7 = inlined_call_operand.hbm [shape: f32[8,16], index: 7, kind: output, shape index: {}]  }
   0x1   :  { %12 = sst [smem:[#allocation4]] %s1611_s0 }
   0x2   :  { %13 = vsyncpa [#allocation6], 0 }
   0x3   :  { %15 = vsyncpa [#allocation6 + $0x1], 0 }
   0x4   :  { %16 = vsyncpa [#allocation7], 0  ;;  %s1357_s26 = smov 0   ;;  %s1359_s27 = smov 0  }
   0x5   :  { %s1361_s28 = smov 0   ;;  %s1363_s29 = smov 0  }
   0x6   :  { %s1365_s30 = smov 0   ;;  %s1367_s8 = smov 0  }
   0x7 LB: > { %s982_s0 = sadd.s32 4294967295, %s1299_s8   ;;  %s31_s9 = sadd.s32 1, %s1295_s30  ;;  %s1299_s8 = sphi %s1367_s8, %s22_s8   ;;  %s1295_s30 = sphi %s1365_s30, %s1627_s30   ;;  %s1291_s29 = sphi %s1363_s29, %s1626_s29   ;;  %s1287_s28 = sphi %s1361_s28, %s1625_s28   ;;  %s1283_s27 = sphi %s1359_s27, %s1624_s27   ;;  %s1279_s26 = sphi %s1357_s26, %s1623_s26  }
   0x8   : > { %p32_p0 = scmp.ge.s32.totalorder %s31_s9, 2  ;;  %s69_s10 = sadd.s32 1, %s1287_s28 }
   0x9   : > { %p76_p1 = scmp.ne.s32.totalorder %s1287_s28, %s1283_s27  ;;  %p77_p2 = scmp.eq.s32.totalorder %s1299_s8, 0 }
   0xa   : > { %s1629_s9 = smov (%p32_p0, %s31_s9), 0  ;;  %p82_p4 = scmp.ne.s32.totalorder %s1283_s27, %s1279_s26 }
   0xb   : > { %p1393_p3 = por %p77_p2, %p76_p1  ;;  %s64_s12 = ssub.s32 %s1295_s30, %s1629_s9 }
   0xc   : > { %p83_p5 = scmp.eq.s32.totalorder %s982_s0, 0  ;;  %p67_p6 = scmp.eq.s32.totalorder %s64_s12, 0 }
   0xd   : > { %p1104_p8 = scmp.lt.s32.totalorder %s1299_s8, 2  ;;  %s235_s15 = sand.u32 1, %s1287_s28  }
   0xe   : > { %p1402_p7 = por %p83_p5, %p82_p4  ;;  %s1013_s16 = sshll.u32 %s1295_s30, 9 }
   0xf   : > { %s1408_s14 = scalar_select %p67_p6, %s1287_s28, %s69_s10  }
  0x10   : > { %s986_s17 = sshll.u32 %s235_s15, 5  ;;  %s246_s20 = scalar_lea.hbm %s1613_s2, %s1013_s16 }
  0x11   : > { %s239_s21 = scalar_lea.vmem [#allocation5], %s986_s17  ;;  %p1417_p9 = pnand %p1104_p8, %p1393_p3 }
  0x12   : > { %s247_s22 = sshll.u32 %s239_s21, 4  ;;  %s236_s24 = scalar_lea.sflag [#allocation6], %s235_s15  ;;  %s248_s22 = int_to_ptr.vmem [resolvable:$true] %s247_s22 }
  0x13   : > { %p1195_p10 = pneg %p1417_p9  ;;  %s1206_s25 = scalar_lea.vmem %s248_s22, 512 }
  0x14   : > { %p1207_p11 = scmp.ne.s32.totalorder %s248_s22, %s1206_s25  ;;  %s1301_s26 = smov [#allocation5]  }
  0x15   : > { %s1211_s10 = sshll.u32 %s1301_s26, 4  ;;  %s1212_s10 = int_to_ptr.vmem [resolvable:$false] %s1211_s10 }
  0x16   : > { %p1209_p12 = pnand %p1207_p11, %p1195_p10  ;;  %s1213_s12 = scalar_lea.vmem %s1212_s10, 1024 }
  0x17   : > { %p1214_p0 = scmp.lt.s32.totalorder %s248_s22, %s1212_s10  ;;  %p1215_p1 = scmp.lt.s32.totalorder %s1213_s12, %s1206_s25 }
  0x18   : > { %p1210_p13 = pneg %p1209_p12 }
  0x19   : > { %p1216_p2 = por %p1215_p1, %p1214_p0 }
  0x1b   : > { %p1217_p3 = pnand %p1216_p2, %p1210_p13 }
  0x1d   : > { %1220 = shalt.err (!%p1217_p3)
}
  0x1e   : > { %s1302_s11 = smov 128   ;;  %s1303_s15 = smov 8  }
  0x1f   : > { %1103 = dma.hbm_to_vmem [thread:$0]  (!%p1417_p9), %s246_s20, 512, %s248_s22, %s236_s24, %s1302_s11, %s1302_s11, %s1303_s15  }
  0x20   : > { %p989_p4 = scmp.ge.s32.totalorder %s1299_s8, 1  ;;  %p255_p5 = scmp.lt.s32.totalorder %s1299_s8, 3 }
  0x22   : > { %p256_p6 = pnand %p989_p4, %p255_p5 }
  0x23   : > { %s261_s16 = sand.u32 (!%p256_p6), 1, %s1283_s27  }
  0x24   : > { %259 = sbr.rel (%p256_p6) target bundleno = 3037 (0xbdd), region = 44  ;;  %s990_s17 = sshll.u32 (!%p256_p6), %s261_s16, 5 }
  0x25   : > { %s262_s18 = scalar_lea.sflag (!%p256_p6), [#allocation6], %s261_s16  ;;  %s1428_s19 = scalar_lea.vmem (!%p256_p6), [#allocation5], %s990_s17 }
  0x29   : > { %1270 = dma.done.wait (%p1402_p7), %s262_s18, 512  }
  0x2a   : > { %1272 = vsyncadd (%p1402_p7), %s262_s18, 4294966784  ;;  %p991_p8 = scmp.ne.s32.totalorder %s1291_s29, 0 }
  0x2c   : > { %301 = sbr.rel (%p991_p8) target bundleno = 51 (0x33), region = 52 }
  0x31   : > { %vm302_vm0 = vcmask 261120   ;;  %v1304_v0 = vmov 0.0  }
  0x32   : > { %303 = vst.msk [vmem:[#allocation2] sm:$0xff] %vm302_vm0, %v1304_v0 }
  0x33 PF: > { %s304_s20 = sld [smem:[#allocation4]]  ;;  %v1438_v1 = vld [vmem:[%s1612_s1] sm:$0xff]  ;;  %v1448_v3 = vld [vmem:[%s1614_s3 + $0x8] sm:$0xff]  ;;  %s1451_s26 = sshll.u32 %s1291_s29, 2  ;;  %v1456_v4 = vld [vmem:[%s1614_s3 + $0x10] sm:$0xff] }
  0x34   : > { %v1443_v2 = vld [vmem:[%s1614_s3] sm:$0xff]  ;;  %v1461_v5 = vld [vmem:[%s1614_s3 + $0x18] sm:$0xff] }
  0x35   : > { %v996_v6 = vld [vmem:[%s1615_s4] ss:$0 sm:$0xff] }
  0x39   : > { %p993_p7 = scmp.ge.s32.totalorder %s1451_s26, %s304_s20 }
  0x3a   : > { %s1307_s18 = smov (!%p993_p7), 64   ;;  %s1309_s20 = smov (!%p993_p7), 32  }
  0x3b   : > { %315 = sbr.rel (%p993_p7) target bundleno = 2810 (0xafa), region = 56  ;;  %s1310_s21 = smov (!%p993_p7), 96  }
  0x3c   : > { %s443_s22 = sadd.s32 (!%p993_p7), 1, %s1451_s26  ;;  %s563_s23 = sadd.s32 (!%p993_p7), 2, %s1451_s26 }
  0x3d   : > { %s683_s24 = sadd.s32 (!%p993_p7), 3, %s1451_s26 }
  0x40   : > { %v1305_v7 = vmov 0.0   ;;  %vm1306_vm1 = vmmov 0   ;;  %404 = vrot.lane.b32.xlu0 %v996_v6, %s1307_s18  ;;  %v316_v8 = vld [vmem:[#allocation2] sm:$0xff]  ;;  %vm318_vm2 = vcmask 261120   ;;  %v1308_v9 = vmov 0   ;;  %v317_v14 = vld [vmem:[%s1428_s19] sm:$0xff] }
  0x41   : > { %1039 = vmatprep.subr.mxu0 %v1305_v7  ;;  %1047 = vmatprep.mubr.msk.f32.mxu0 %vm1306_vm1, %v1305_v7  ;;  %v430_v19 = vstv %s1451_s26  ;;  %v550_v37 = vstv %s443_s22  ;;  %v997_v42 = vld [vmem:[%s1428_s19 + $0x8] sm:$0xff]  ;;  %v670_v63 = vstv %s563_s23 }
  0x42   : > { %1040 = vmatpush3.msra.mxu0 %v1461_v5  ;;  %1050 = vmatprep.subr.mxu1 %v1305_v7  ;;  %vm431_vm3 = vcmp.lt.s32.totalorder %v430_v19, %v1438_v1  ;;  %vm551_vm5 = vcmp.lt.s32.totalorder %v550_v37, %v1438_v1  ;;  %vm671_vm7 = vcmp.lt.s32.totalorder %v670_v63, %v1438_v1 }
  0x43   : > { %1041 = vmatprep.subr.mxu0 %v1305_v7  ;;  %1051 = vmatpush3.msra.mxu1 %v1461_v5  ;;  %v432_v23 = vsel %vm431_vm3, 1, %v1308_v9  ;;  %v552_v41 = vsel %vm551_vm5, 1, %v1308_v9 }
  0x44   : > { %1042 = vmatpush3.msra.mxu0 %v1456_v4  ;;  %1052 = vmatprep.subr.mxu1 %v1305_v7 }
  0x45   : > { %1043 = vmatprep.subr.mxu0 %v1305_v7  ;;  %1053 = vmatpush3.msra.mxu1 %v1456_v4 }
  0x46   : > { %1044 = vmatpush3.msra.mxu0 %v1448_v3  ;;  %1054 = vmatprep.subr.mxu1 %v1305_v7 }
  0x47   : > { %1045 = vmatprep.subr.mxu0 %v1305_v7  ;;  %1055 = vmatpush3.msra.mxu1 %v1448_v3 }
  0x48   : > { %1046 = vmatpush3.msra.mxu0 %v1443_v2  ;;  %1056 = vmatprep.subr.mxu1 %v1305_v7 }
  0x49   : > { %1048 = vmatmul.mubr.msk.f32.vlgmr.msra.gmra.mxu0 %vm318_vm2, %v316_v8  ;;  %1057 = vmatpush3.msra.mxu1 %v1443_v2 }
  0x4a   : > { %1058 = vmatprep.mubr.msk.f32.mxu1 %vm1306_vm1, %v1305_v7  ;;  %1061 = vmatprep.subr.mxu0 %v1305_v7 }
  0x4b   : > { %1069 = vmatprep.mubr.msk.f32.mxu0 %vm1306_vm1, %v1305_v7  ;;  %1062 = vmatpush3.msra.mxu0 %v1461_v5 }
  0x4c   : > { %1072 = vmatprep.subr.mxu1 %v1305_v7  ;;  %1063 = vmatprep.subr.mxu0 %v1305_v7 }
  0x4d   : > { %1064 = vmatpush3.msra.mxu0 %v1456_v4  ;;  %1167 = vset.pattern.permute.xlu1 %v1308_v9 }
  0x4e   : > { %1065 = vmatprep.subr.mxu0 %v1305_v7  ;;  %1168 = vset.pattern.permute.xlu0 %v1308_v9 }
  0x4f   : > { %1066 = vmatpush3.msra.mxu0 %v1448_v3 }
  0x50   : > { %1067 = vmatprep.subr.mxu0 %v1305_v7 }
  0x51   : > { %1068 = vmatpush3.msra.mxu0 %v1443_v2 }
  0xb2   : > { %v1502_v10 = vpop.permute.xlu0 %404 }
 0x109   : > { %v388_v11 = vpop.f32.mrf.mxu0 }
 0x10a   : > { %v407_v12 = vadd.f32 %v1502_v10, %v388_v11  ;;  %v392_v15 = vadd.f32 %v388_v11, %v317_v14 }
 0x10b   : > { %v1049_v13 = vpop.f32.mrf.mxu0 }
 0x10c   : > { %409 = vrot.lane.b32.xlu0 %v407_v12, %s1307_s18  ;;  %v995_v16 = vmul.f32 -1.442695, %v392_v15 }
 0x10e   : > { %1169 = vpow2.f32 %v995_v16 }
 0x11b   : > { %v1170_v17 = vpop.eup %1169 }
 0x11c   : > { %v396_v18 = vadd.f32 1.0, %v1170_v17 }
 0x11e   : > { %1171 = vrcp.f32 %v396_v18 }
 0x12b   : > { %v1172_v20 = vpop.eup %1171 }
 0x12c   : > { %v419_v29 = vsub.f32 1.0, %v1172_v20 }
 0x17e   : > { %v410_v21 = vpop.permute.xlu0 %409 }
 0x17f   : > { %v412_v22 = vmul.f32 %v1172_v20, %v410_v21 }
 0x181   : > { %414 = vrot.lane.b32.xlu1 %v412_v22, %s1307_s18 }
 0x185   : > { %434 = vperm.xlu1 %1167, %v432_v23  }
 0x189   : > { %425 = vrot.lane.b32.xlu1 %v316_v8, %s1309_s20 }
 0x1f3   : > { %v415_v24 = vpop.permute.xlu1 %414 }
 0x1f4   : > { %v417_v25 = vadd.f32 %v415_v24, %v317_v14 }
 0x1f6   : > { %1173 = vtanh.f32 %v417_v25 }
 0x200   : > { %v435_v27 = vpop.permute.xlu1 %434 }
 0x201   : > { %vm436_vm4 = vcmp.eq.s32.totalorder %v435_v27, 1 }
 0x203   : > { %v1174_v26 = vpop.eup %1173 }
 0x204   : > { %421 = vrot.lane.b32.xlu0 %v1174_v26, %s1310_s21  ;;  %v426_v28 = vpop.permute.xlu1 %425 }
 0x205   : > { %v428_v31 = vmul.f32 %v1172_v20, %v426_v28 }
 0x276   : > { %v422_v30 = vpop.permute.xlu0 %421 }
 0x277   : > { %v424_v32 = vmul.f32 %v422_v30, %v419_v29 }
 0x279   : > { %v429_v33 = vadd.f32 %v428_v31, %v424_v32 }
 0x27b   : > { %v437_v34 = vsel %vm436_vm4, %v429_v33, %v426_v28  ;;  %v790_v28 = vstv %s683_s24  ;;  %v1003_v33 = vld [vmem:[%s1428_s19 + $0x18] sm:$0xff] }
 0x27c   : > { %439 = vrot.lane.b32.xlu0 %v437_v34, %s1310_s21  ;;  %vm791_vm9 = vcmp.lt.s32.totalorder %v790_v28, %v1438_v1 }
 0x27d   : > { %v792_v32 = vsel %vm791_vm9, 1, %v1308_v9 }
 0x2ee   : > { %v440_v35 = vpop.permute.xlu0 %439 }
 0x2ef   : > { %442 = vst.msk [vmem:[#allocation2] sm:$0xff] %vm318_vm2, %v440_v35 }
 0x2f6   : > { %v444_v36 = vld [vmem:[#allocation2] sm:$0xff] }
 0x2f7   : > { %1059 = vmatmul.mubr.msk.f32.vlgmr.msra.gmra.mxu1 %vm318_vm2, %v444_v36 }
 0x2f8   : > { %1073 = vmatpush3.msra.mxu1 %v1461_v5  ;;  %1080 = vmatprep.mubr.msk.f32.mxu1 %vm1306_vm1, %v1305_v7  ;;  %v1000_v5 = vld [vmem:[%s1428_s19 + $0x10] sm:$0xff] }
 0x2f9   : > { %1074 = vmatprep.subr.mxu1 %v1305_v7 }
 0x2fa   : > { %1075 = vmatpush3.msra.mxu1 %v1456_v4  ;;  %v672_v4 = vsel %vm671_vm7, 1, %v1308_v9 }
 0x2fb   : > { %1076 = vmatprep.subr.mxu1 %v1305_v7 }
 0x2fc   : > { %1077 = vmatpush3.msra.mxu1 %v1448_v3 }
 0x2fd   : > { %1078 = vmatprep.subr.mxu1 %v1305_v7 }
 0x2fe   : > { %1079 = vmatpush3.msra.mxu1 %v1443_v2 }
 0x3b7   : > { %v516_v38 = vpop.f32.mrf.mxu1 }
 0x3b8   : > { %v527_v39 = vadd.f32 %v516_v38, %v1502_v10  ;;  %v520_v43 = vadd.f32 %v997_v42, %v516_v38 }
 0x3b9   : > { %v1060_v40 = vpop.f32.mrf.mxu1 }
 0x3ba   : > { %529 = vrot.lane.b32.xlu1 %v527_v39, %s1307_s18  ;;  %v999_v44 = vmul.f32 -1.442695, %v520_v43 }
 0x3bc   : > { %1175 = vpow2.f32 %v999_v44 }
 0x3be   : > { %554 = vperm.xlu1 %1167, %v552_v41  }
 0x3c2   : > { %545 = vrot.lane.b32.xlu1 %v444_v36, %s1309_s20 }
 0x3c9   : > { %v1176_v45 = vpop.eup %1175 }
 0x3ca   : > { %v524_v46 = vadd.f32 1.0, %v1176_v45 }
 0x3cc   : > { %1177 = vrcp.f32 %v524_v46 }
 0x3d9   : > { %v1178_v47 = vpop.eup %1177 }
 0x3da   : > { %v539_v55 = vsub.f32 1.0, %v1178_v47 }
 0x42c   : > { %v530_v48 = vpop.permute.xlu1 %529 }
 0x42d   : > { %v532_v49 = vmul.f32 %v1178_v47, %v530_v48 }
 0x42f   : > { %534 = vrot.lane.b32.xlu0 %v532_v49, %s1307_s18 }
 0x439   : > { %v555_v53 = vpop.permute.xlu1 %554 }
 0x43a   : > { %vm556_vm6 = vcmp.eq.s32.totalorder %v555_v53, 1 }
 0x43d   : > { %v546_v54 = vpop.permute.xlu1 %545 }
 0x43e   : > { %v548_v57 = vmul.f32 %v1178_v47, %v546_v54 }
 0x4a1   : > { %v535_v50 = vpop.permute.xlu0 %534 }
 0x4a2   : > { %v537_v51 = vadd.f32 %v997_v42, %v535_v50 }
 0x4a4   : > { %1179 = vtanh.f32 %v537_v51 }
 0x4b1   : > { %v1180_v52 = vpop.eup %1179 }
 0x4b2   : > { %541 = vrot.lane.b32.xlu0 %v1180_v52, %s1310_s21 }
 0x524   : > { %v542_v56 = vpop.permute.xlu0 %541 }
 0x525   : > { %v544_v58 = vmul.f32 %v542_v56, %v539_v55 }
 0x527   : > { %v549_v59 = vadd.f32 %v548_v57, %v544_v58 }
 0x529   : > { %v557_v60 = vsel %vm556_vm6, %v549_v59, %v546_v54 }
 0x52a   : > { %559 = vrot.lane.b32.xlu0 %v557_v60, %s1310_s21 }
 0x59c   : > { %v560_v61 = vpop.permute.xlu0 %559 }
 0x59d   : > { %562 = vst.msk [vmem:[#allocation2] sm:$0xff] %vm318_vm2, %v560_v61 }
 0x5a4   : > { %v564_v62 = vld [vmem:[#allocation2] sm:$0xff] }
 0x5a5   : > { %1070 = vmatmul.mubr.msk.f32.vlgmr.msra.gmra.mxu0 %vm318_vm2, %v564_v62 }
 0x665   : > { %v636_v0 = vpop.f32.mrf.mxu0 }
 0x666   : > { %v647_v2 = vadd.f32 %v636_v0, %v1502_v10  ;;  %v640_v6 = vadd.f32 %v1000_v5, %v636_v0 }
 0x667   : > { %v1071_v3 = vpop.f32.mrf.mxu0 }
 0x668   : > { %649 = vrot.lane.b32.xlu1 %v647_v2, %s1307_s18  ;;  %v1002_v7 = vmul.f32 -1.442695, %v640_v6 }
 0x66a   : > { %1181 = vpow2.f32 %v1002_v7 }
 0x66c   : > { %674 = vperm.xlu1 %1167, %v672_v4  }
 0x670   : > { %665 = vrot.lane.b32.xlu1 %v564_v62, %s1309_s20 }
 0x677   : > { %v1182_v8 = vpop.eup %1181 }
 0x678   : > { %v644_v11 = vadd.f32 1.0, %v1182_v8 }
 0x67a   : > { %1183 = vrcp.f32 %v644_v11 }
 0x687   : > { %v1184_v12 = vpop.eup %1183 }
 0x688   : > { %v659_v20 = vsub.f32 1.0, %v1184_v12 }
 0x6da   : > { %v650_v13 = vpop.permute.xlu1 %649 }
 0x6db   : > { %v652_v14 = vmul.f32 %v1184_v12, %v650_v13 }
 0x6dd   : > { %654 = vrot.lane.b32.xlu0 %v652_v14, %s1307_s18 }
 0x6e7   : > { %v675_v18 = vpop.permute.xlu1 %674 }
 0x6e8   : > { %vm676_vm8 = vcmp.eq.s32.totalorder %v675_v18, 1 }
 0x6eb   : > { %v666_v19 = vpop.permute.xlu1 %665 }
 0x6ec   : > { %v668_v22 = vmul.f32 %v1184_v12, %v666_v19 }
 0x74f   : > { %v655_v15 = vpop.permute.xlu0 %654 }
 0x750   : > { %v657_v16 = vadd.f32 %v1000_v5, %v655_v15 }
 0x752   : > { %1185 = vtanh.f32 %v657_v16 }
 0x75f   : > { %v1186_v17 = vpop.eup %1185 }
 0x760   : > { %661 = vrot.lane.b32.xlu0 %v1186_v17, %s1310_s21 }
 0x7d2   : > { %v662_v21 = vpop.permute.xlu0 %661 }
 0x7d3   : > { %v664_v23 = vmul.f32 %v662_v21, %v659_v20 }
 0x7d5   : > { %v669_v24 = vadd.f32 %v668_v22, %v664_v23 }
 0x7d7   : > { %v677_v25 = vsel %vm676_vm8, %v669_v24, %v666_v19 }
 0x7d8   : > { %679 = vrot.lane.b32.xlu0 %v677_v25, %s1310_s21 }
 0x84a   : > { %v680_v26 = vpop.permute.xlu0 %679 }
 0x84b   : > { %682 = vst.msk [vmem:[#allocation2] sm:$0xff] %vm318_vm2, %v680_v26 }
 0x852   : > { %v684_v27 = vld [vmem:[#allocation2] sm:$0xff] }
 0x853   : > { %1081 = vmatmul.mubr.msk.f32.vlgmr.msra.gmra.mxu1 %vm318_vm2, %v684_v27 }
 0x913   : > { %v756_v29 = vpop.f32.mrf.mxu1 }
 0x914   : > { %v767_v30 = vadd.f32 %v756_v29, %v1502_v10  ;;  %v760_v34 = vadd.f32 %v1003_v33, %v756_v29 }
 0x915   : > { %v1082_v31 = vpop.f32.mrf.mxu1 }
 0x916   : > { %769 = vrot.lane.b32.xlu1 %v767_v30, %s1307_s18  ;;  %v1005_v35 = vmul.f32 -1.442695, %v760_v34 }
 0x918   : > { %1187 = vpow2.f32 %v1005_v35 }
 0x91a   : > { %794 = vperm.xlu1 %1167, %v792_v32  }
 0x91e   : > { %785 = vrot.lane.b32.xlu1 %v684_v27, %s1309_s20 }
 0x925   : > { %v1188_v36 = vpop.eup %1187 }
 0x926   : > { %v764_v37 = vadd.f32 1.0, %v1188_v36 }
 0x928   : > { %1189 = vrcp.f32 %v764_v37 }
 0x935   : > { %v1190_v38 = vpop.eup %1189 }
 0x936   : > { %v779_v43 = vsub.f32 1.0, %v1190_v38 }
 0x988   : > { %v770_v39 = vpop.permute.xlu1 %769 }
 0x989   : > { %v772_v10 = vmul.f32 %v1190_v38, %v770_v39 }
 0x98b   : > { %774 = vrot.lane.b32.xlu0 %v772_v10, %s1307_s18 }
 0x995   : > { %v795_v9 = vpop.permute.xlu1 %794 }
 0x996   : > { %vm796_vm10 = vcmp.eq.s32.totalorder %v795_v9, 1 }
 0x999   : > { %v786_v42 = vpop.permute.xlu1 %785 }
 0x99a   : > { %v788_v45 = vmul.f32 %v1190_v38, %v786_v42 }
 0x9fd   : > { %v775_v1 = vpop.permute.xlu0 %774 }
 0x9fe   : > { %v777_v40 = vadd.f32 %v1003_v33, %v775_v1 }
 0xa00   : > { %1191 = vtanh.f32 %v777_v40 }
 0xa0d   : > { %v1192_v41 = vpop.eup %1191 }
 0xa0e   : > { %781 = vrot.lane.b32.xlu0 %v1192_v41, %s1310_s21 }
 0xa80   : > { %v782_v44 = vpop.permute.xlu0 %781 }
 0xa81   : > { %v784_v46 = vmul.f32 %v782_v44, %v779_v43 }
 0xa83   : > { %v789_v47 = vadd.f32 %v788_v45, %v784_v46 }
 0xa85   : > { %v797_v48 = vsel %vm796_vm10, %v789_v47, %v786_v42 }
 0xa86   : > { %799 = vrot.lane.b32.xlu0 %v797_v48, %s1310_s21 }
 0xaf8   : > { %v800_v49 = vpop.permute.xlu0 %799 }
 0xaf9   : > { %802 = vst.msk [vmem:[#allocation2] sm:$0xff] %vm318_vm2, %v800_v49 }
 0xafa PF: > { %p1006_p9 = scmp.ne.s32.totalorder %s1291_s29, 1 }
 0xafc   : > { %806 = sbr.rel (%p1006_p9) target bundleno = 3022 (0xbce), region = 60 }
 0xb01   : > { %v811_v50 = vld [vmem:[%s1616_s5 + $0x18] sm:$0xff]  ;;  %v1311_v51 = vmov 0.0   ;;  %v810_v52 = vld [vmem:[%s1616_s5 + $0x10] sm:$0xff]  ;;  %vm1312_vm11 = vmmov 0   ;;  %v809_v53 = vld [vmem:[%s1616_s5 + $0x8] sm:$0xff]  ;;  %vm819_vm12 = vcmask 261120  }
 0xb02   : > { %1083 = vmatprep.subr.mxu0 %v1311_v51  ;;  %1091 = vmatprep.mubr.msk.f32.mxu0 %vm1312_vm11, %v1311_v51  ;;  %v808_v54 = vld [vmem:[%s1616_s5] sm:$0xff]  ;;  %vm893_vm13 = vcmask 130048  }
 0xb03   : > { %1084 = vmatpush3.msra.mxu0 %v811_v50  ;;  %v807_v55 = vld [vmem:[#allocation2] sm:$0xff] }
 0xb04   : > { %1085 = vmatprep.subr.mxu0 %v1311_v51  ;;  %v1007_v56 = vld [vmem:[%s1617_s6] ss:$0 sm:$0xff] }
 0xb05   : > { %1086 = vmatpush3.msra.mxu0 %v810_v52 }
 0xb06   : > { %1087 = vmatprep.subr.mxu0 %v1311_v51 }
 0xb07   : > { %1088 = vmatpush3.msra.mxu0 %v809_v53 }
 0xb08   : > { %1089 = vmatprep.subr.mxu0 %v1311_v51 }
 0xb09   : > { %1090 = vmatpush3.msra.mxu0 %v808_v54 }
 0xb0a   : > { %1092 = vmatmul.mubr.msk.f32.vlgmr.msra.gmra.mxu0 %vm819_vm12, %v807_v55 }
 0xbca   : > { %v889_v57 = vpop.f32.mrf.mxu0 }
 0xbcb   : > { %v890_v58 = vadd.f32 %v1007_v56, %v889_v57 }
 0xbcc   : > { %v1093_v59 = vpop.f32.mrf.mxu0 }
 0xbcd   : > { %894 = vst.msk [vmem:[#allocation8] sm:$0xff] %vm893_vm13, %v890_v58 }
 0xbce PF: > { %p1578_p10 = scmp.eq.s32.totalorder %s982_s0, 1  ;;  %s1313_s18 = smov [#allocation8]  }
 0xbcf   : > { %s904_s20 = sshll.u32 %s1313_s18, 4  ;;  %s905_s20 = int_to_ptr.vmem [resolvable:$true] %s904_s20 }
 0xbd0   : > { %s1221_s21 = scalar_lea.vmem %s905_s20, 128  ;;  %p1228_p0 = scmp.lt.s32.totalorder %s905_s20, %s905_s20 }
 0xbd1   : > { %p1222_p11 = scmp.ne.s32.totalorder %s905_s20, %s1221_s21  ;;  %p1229_p1 = scmp.lt.s32.totalorder %s1221_s21, %s1221_s21 }
 0xbd3   : > { %p1223_p12 = pnand %p1222_p11, %p1578_p10  ;;  %p1230_p2 = por %p1229_p1, %p1228_p0 }
 0xbd5   : > { %p1224_p13 = pneg %p1223_p12 }
 0xbd7   : > { %p1231_p3 = pnand %p1230_p2, %p1224_p13 }
 0xbd9   : > { %1234 = shalt.err (!%p1231_p3)
}
 0xbda   : > { %1097 = dma.vmem_to_hbm [thread:$0]  (%p1578_p10), %s905_s20, 128, %s1618_s7, [#allocation7]  }
 0xbdb   : > { %1274 = dma.done.wait (%p1578_p10), [#allocation7], 128  }
 0xbdc   : > { %1276 = vsyncadd (%p1578_p10), [#allocation7], 4294967168 }
 0xbdd PF: > { %s22_s8 = sadd.s32 1, %s1299_s8   ;;  %s1623_s26 = smov %s1283_s27 }
 0xbde   : > { %p19_p4 = scmp.ge.s32.totalorder %s22_s8, 4   ;;  %s1624_s27 = smov %s1287_s28 }
 0xbdf   : > { %s1625_s28 = smov %s1408_s14  ;;  %s1626_s29 = smov %s1295_s30 }
 0xbe0   : > { %s1627_s30 = smov %s1629_s9  ;;  %21 = sbr.rel (!%p19_p4) target bundleno = 7 (0x7), region = 100 }
 0xbe5   :  { %917 = vsyncpa [#allocation6], 1 }
 0xbe6   :  { %919 = vsyncpa [#allocation6 + $0x1], 1 }
 0xbe7   :  { %920 = vsyncpa [#allocation7], 1 }
 0xbe8   :  { %922 = vsyncpa [#allocation7 + $0x1], 1 }

// kernel: tpu_custom_call.1
= control target key start
LH: loop header
LB: loop body
LE: loop exit
PB: predicated region body
PF: predicated region fallthrough
CT: control target
= control target key end

     0   :  { %s1611_s0 = inlined_call_operand.<no memory space> [shape: s32[1], index: 0, kind: input, shape index: {}]   ;;  %s1612_s1 = inlined_call_operand.vmem [shape: s32[8,1], index: 1, kind: input, shape index: {}]   ;;  %s1613_s2 = inlined_call_operand.hbm [shape: f32[8,8,96], index: 2, kind: input, shape index: {}]   ;;  %s1614_s3 = inlined_call_operand.vmem [shape: f32[32,96], index: 3, kind: input, shape index: {}]   ;;  %s1615_s4 = inlined_call_operand.vmem [shape: f32[1,32], index: 4, kind: input, shape index: {}]   ;;  %s1616_s5 = inlined_call_operand.vmem [shape: f32[32,16], index: 5, kind: input, shape index: {}]   ;;  %s1617_s6 = inlined_call_operand.vmem [shape: f32[1,16], index: 6, kind: input, shape index: {}]   ;;  %s1618_s7 = inlined_call_operand.hbm [shape: f32[8,16], index: 7, kind: output, shape index: {}]  }
   0x1   :  { %12 = sst [smem:[#allocation4]] %s1611_s0 }
   0x2   :  { %13 = vsyncpa [#allocation6], 0 }
   0x3   :  { %15 = vsyncpa [#allocation6 + $0x1], 0 }
   0x4   :  { %16 = vsyncpa [#allocation7], 0  ;;  %s1357_s26 = smov 0   ;;  %s1359_s27 = smov 0  }
   0x5   :  { %s1361_s28 = smov 0   ;;  %s1363_s29 = smov 0  }
   0x6   :  { %s1365_s30 = smov 0   ;;  %s1367_s8 = smov 0  }
   0x7 LB: > { %s982_s0 = sadd.s32 4294967295, %s1299_s8   ;;  %s31_s9 = sadd.s32 1, %s1295_s30  ;;  %s1299_s8 = sphi %s1367_s8, %s22_s8   ;;  %s1295_s30 = sphi %s1365_s30, %s1627_s30   ;;  %s1291_s29 = sphi %s1363_s29, %s1626_s29   ;;  %s1287_s28 = sphi %s1361_s28, %s1625_s28   ;;  %s1283_s27 = sphi %s1359_s27, %s1624_s27   ;;  %s1279_s26 = sphi %s1357_s26, %s1623_s26  }
   0x8   : > { %p32_p0 = scmp.ge.s32.totalorder %s31_s9, 2  ;;  %s69_s10 = sadd.s32 1, %s1287_s28 }
   0x9   : > { %p76_p1 = scmp.ne.s32.totalorder %s1287_s28, %s1283_s27  ;;  %p77_p2 = scmp.eq.s32.totalorder %s1299_s8, 0 }
   0xa   : > { %s1629_s9 = smov (%p32_p0, %s31_s9), 0  ;;  %p82_p4 = scmp.ne.s32.totalorder %s1283_s27, %s1279_s26 }
   0xb   : > { %p1393_p3 = por %p77_p2, %p76_p1  ;;  %s64_s12 = ssub.s32 %s1295_s30, %s1629_s9 }
   0xc   : > { %p83_p5 = scmp.eq.s32.totalorder %s982_s0, 0  ;;  %p67_p6 = scmp.eq.s32.totalorder %s64_s12, 0 }
   0xd   : > { %p1104_p8 = scmp.lt.s32.totalorder %s1299_s8, 2  ;;  %s235_s15 = sand.u32 1, %s1287_s28  }
   0xe   : > { %p1402_p7 = por %p83_p5, %p82_p4  ;;  %s1013_s16 = sshll.u32 %s1295_s30, 9 }
   0xf   : > { %s1408_s14 = scalar_select %p67_p6, %s1287_s28, %s69_s10  }
  0x10   : > { %s986_s17 = sshll.u32 %s235_s15, 5  ;;  %s246_s20 = scalar_lea.hbm %s1613_s2, %s1013_s16 }
  0x11   : > { %s239_s21 = scalar_lea.vmem [#allocation5], %s986_s17  ;;  %p1417_p9 = pnand %p1104_p8, %p1393_p3 }
  0x12   : > { %s247_s22 = sshll.u32 %s239_s21, 4  ;;  %s236_s24 = scalar_lea.sflag [#allocation6], %s235_s15  ;;  %s248_s22 = int_to_ptr.vmem [resolvable:$true] %s247_s22 }
  0x13   : > { %p1195_p10 = pneg %p1417_p9  ;;  %s1206_s25 = scalar_lea.vmem %s248_s22, 512 }
  0x14   : > { %p1207_p11 = scmp.ne.s32.totalorder %s248_s22, %s1206_s25  ;;  %s1301_s26 = smov [#allocation5]  }
  0x15   : > { %s1211_s10 = sshll.u32 %s1301_s26, 4  ;;  %s1212_s10 = int_to_ptr.vmem [resolvable:$false] %s1211_s10 }
  0x16   : > { %p1209_p12 = pnand %p1207_p11, %p1195_p10  ;;  %s1213_s12 = scalar_lea.vmem %s1212_s10, 1024 }
  0x17   : > { %p1214_p0 = scmp.lt.s32.totalorder %s248_s22, %s1212_s10  ;;  %p1215_p1 = scmp.lt.s32.totalorder %s1213_s12, %s1206_s25 }
  0x18   : > { %p1210_p13 = pneg %p1209_p12 }
  0x19   : > { %p1216_p2 = por %p1215_p1, %p1214_p0 }
  0x1b   : > { %p1217_p3 = pnand %p1216_p2, %p1210_p13 }
  0x1d   : > { %1220 = shalt.err (!%p1217_p3)
}
  0x1e   : > { %s1302_s11 = smov 128   ;;  %s1303_s15 = smov 8  }
  0x1f   : > { %1103 = dma.hbm_to_vmem [thread:$0]  (!%p1417_p9), %s246_s20, 512, %s248_s22, %s236_s24, %s1302_s11, %s1302_s11, %s1303_s15  }
  0x20   : > { %p989_p4 = scmp.ge.s32.totalorder %s1299_s8, 1  ;;  %p255_p5 = scmp.lt.s32.totalorder %s1299_s8, 3 }
  0x22   : > { %p256_p6 = pnand %p989_p4, %p255_p5 }
  0x23   : > { %s261_s16 = sand.u32 (!%p256_p6), 1, %s1283_s27  }
  0x24   : > { %259 = sbr.rel (%p256_p6) target bundleno = 3037 (0xbdd), region = 44  ;;  %s990_s17 = sshll.u32 (!%p256_p6), %s261_s16, 5 }
  0x25   : > { %s262_s18 = scalar_lea.sflag (!%p256_p6), [#allocation6], %s261_s16  ;;  %s1428_s19 = scalar_lea.vmem (!%p256_p6), [#allocation5], %s990_s17 }
  0x29   : > { %1270 = dma.done.wait (%p1402_p7), %s262_s18, 512  }
  0x2a   : > { %1272 = vsyncadd (%p1402_p7), %s262_s18, 4294966784  ;;  %p991_p8 = scmp.ne.s32.totalorder %s1291_s29, 0 }
  0x2c   : > { %301 = sbr.rel (%p991_p8) target bundleno = 51 (0x33), region = 52 }
  0x31   : > { %vm302_vm0 = vcmask 261120   ;;  %v1304_v0 = vmov 0.0  }
  0x32   : > { %303 = vst.msk [vmem:[#allocation2] sm:$0xff] %vm302_vm0, %v1304_v0 }
  0x33 PF: > { %s304_s20 = sld [smem:[#allocation4]]  ;;  %v1438_v1 = vld [vmem:[%s1612_s1] sm:$0xff]  ;;  %v1448_v3 = vld [vmem:[%s1614_s3 + $0x8] sm:$0xff]  ;;  %s1451_s26 = sshll.u32 %s1291_s29, 2  ;;  %v1456_v4 = vld [vmem:[%s1614_s3 + $0x10] sm:$0xff] }
  0x34   : > { %v1443_v2 = vld [vmem:[%s1614_s3] sm:$0xff]  ;;  %v1461_v5 = vld [vmem:[%s1614_s3 + $0x18] sm:$0xff] }
  0x35   : > { %v996_v6 = vld [vmem:[%s1615_s4] ss:$0 sm:$0xff] }
  0x39   : > { %p993_p7 = scmp.ge.s32.totalorder %s1451_s26, %s304_s20 }
  0x3a   : > { %s1307_s18 = smov (!%p993_p7), 64   ;;  %s1309_s20 = smov (!%p993_p7), 32  }
  0x3b   : > { %315 = sbr.rel (%p993_p7) target bundleno = 2810 (0xafa), region = 56  ;;  %s1310_s21 = smov (!%p993_p7), 96  }
  0x3c   : > { %s443_s22 = sadd.s32 (!%p993_p7), 1, %s1451_s26  ;;  %s563_s23 = sadd.s32 (!%p993_p7), 2, %s1451_s26 }
  0x3d   : > { %s683_s24 = sadd.s32 (!%p993_p7), 3, %s1451_s26 }
  0x40   : > { %v1305_v7 = vmov 0.0   ;;  %vm1306_vm1 = vmmov 0   ;;  %404 = vrot.lane.b32.xlu0 %v996_v6, %s1307_s18  ;;  %v316_v8 = vld [vmem:[#allocation2] sm:$0xff]  ;;  %vm318_vm2 = vcmask 261120   ;;  %v1308_v9 = vmov 0   ;;  %v317_v14 = vld [vmem:[%s1428_s19] sm:$0xff] }
  0x41   : > { %1039 = vmatprep.subr.mxu0 %v1305_v7  ;;  %1047 = vmatprep.mubr.msk.f32.mxu0 %vm1306_vm1, %v1305_v7  ;;  %v430_v19 = vstv %s1451_s26  ;;  %v550_v37 = vstv %s443_s22  ;;  %v997_v42 = vld [vmem:[%s1428_s19 + $0x8] sm:$0xff]  ;;  %v670_v63 = vstv %s563_s23 }
  0x42   : > { %1040 = vmatpush3.msra.mxu0 %v1461_v5  ;;  %1050 = vmatprep.subr.mxu1 %v1305_v7  ;;  %vm431_vm3 = vcmp.lt.s32.totalorder %v430_v19, %v1438_v1  ;;  %vm551_vm5 = vcmp.lt.s32.totalorder %v550_v37, %v1438_v1  ;;  %vm671_vm7 = vcmp.lt.s32.totalorder %v670_v63, %v1438_v1 }
  0x43   : > { %1041 = vmatprep.subr.mxu0 %v1305_v7  ;;  %1051 = vmatpush3.msra.mxu1 %v1461_v5  ;;  %v432_v23 = vsel %vm431_vm3, 1, %v1308_v9  ;;  %v552_v41 = vsel %vm551_vm5, 1, %v1308_v9 }
  0x44   : > { %1042 = vmatpush3.msra.mxu0 %v1456_v4  ;;  %1052 = vmatprep.subr.mxu1 %v1305_v7 }
  0x45   : > { %1043 = vmatprep.subr.mxu0 %v1305_v7  ;;  %1053 = vmatpush3.msra.mxu1 %v1456_v4 }
  0x46   : > { %1044 = vmatpush3.msra.mxu0 %v1448_v3  ;;  %1054 = vmatprep.subr.mxu1 %v1305_v7 }
  0x47   : > { %1045 = vmatprep.subr.mxu0 %v1305_v7  ;;  %1055 = vmatpush3.msra.mxu1 %v1448_v3 }
  0x48   : > { %1046 = vmatpush3.msra.mxu0 %v1443_v2  ;;  %1056 = vmatprep.subr.mxu1 %v1305_v7 }
  0x49   : > { %1048 = vmatmul.mubr.msk.f32.vlgmr.msra.gmra.mxu0 %vm318_vm2, %v316_v8  ;;  %1057 = vmatpush3.msra.mxu1 %v1443_v2 }
  0x4a   : > { %1058 = vmatprep.mubr.msk.f32.mxu1 %vm1306_vm1, %v1305_v7  ;;  %1061 = vmatprep.subr.mxu0 %v1305_v7 }
  0x4b   : > { %1069 = vmatprep.mubr.msk.f32.mxu0 %vm1306_vm1, %v1305_v7  ;;  %1062 = vmatpush3.msra.mxu0 %v1461_v5 }
  0x4c   : > { %1072 = vmatprep.subr.mxu1 %v1305_v7  ;;  %1063 = vmatprep.subr.mxu0 %v1305_v7 }
  0x4d   : > { %1064 = vmatpush3.msra.mxu0 %v1456_v4  ;;  %1167 = vset.pattern.permute.xlu1 %v1308_v9 }
  0x4e   : > { %1065 = vmatprep.subr.mxu0 %v1305_v7  ;;  %1168 = vset.pattern.permute.xlu0 %v1308_v9 }
  0x4f   : > { %1066 = vmatpush3.msra.mxu0 %v1448_v3 }
  0x50   : > { %1067 = vmatprep.subr.mxu0 %v1305_v7 }
  0x51   : > { %1068 = vmatpush3.msra.mxu0 %v1443_v2 }
  0xb2   : > { %v1502_v10 = vpop.permute.xlu0 %404 }
 0x109   : > { %v388_v11 = vpop.f32.mrf.mxu0 }
 0x10a   : > { %v407_v12 = vadd.f32 %v1502_v10, %v388_v11  ;;  %v392_v15 = vadd.f32 %v388_v11, %v317_v14 }
 0x10b   : > { %v1049_v13 = vpop.f32.mrf.mxu0 }
 0x10c   : > { %409 = vrot.lane.b32.xlu0 %v407_v12, %s1307_s18  ;;  %v995_v16 = vmul.f32 -1.442695, %v392_v15 }
 0x10e   : > { %1169 = vpow2.f32 %v995_v16 }
 0x11b   : > { %v1170_v17 = vpop.eup %1169 }
 0x11c   : > { %v396_v18 = vadd.f32 1.0, %v1170_v17 }
 0x11e   : > { %1171 = vrcp.f32 %v396_v18 }
 0x12b   : > { %v1172_v20 = vpop.eup %1171 }
 0x12c   : > { %v419_v29 = vsub.f32 1.0, %v1172_v20 }
 0x17e   : > { %v410_v21 = vpop.permute.xlu0 %409 }
 0x17f   : > { %v412_v22 = vmul.f32 %v1172_v20, %v410_v21 }
 0x181   : > { %414 = vrot.lane.b32.xlu1 %v412_v22, %s1307_s18 }
 0x185   : > { %434 = vperm.xlu1 %1167, %v432_v23  }
 0x189   : > { %425 = vrot.lane.b32.xlu1 %v316_v8, %s1309_s20 }
 0x1f3   : > { %v415_v24 = vpop.permute.xlu1 %414 }
 0x1f4   : > { %v417_v25 = vadd.f32 %v415_v24, %v317_v14 }
 0x1f6   : > { %1173 = vtanh.f32 %v417_v25 }
 0x200   : > { %v435_v27 = vpop.permute.xlu1 %434 }
 0x201   : > { %vm436_vm4 = vcmp.eq.s32.totalorder %v435_v27, 1 }
 0x203   : > { %v1174_v26 = vpop.eup %1173 }
 0x204   : > { %421 = vrot.lane.b32.xlu0 %v1174_v26, %s1310_s21  ;;  %v426_v28 = vpop.permute.xlu1 %425 }
 0x205   : > { %v428_v31 = vmul.f32 %v1172_v20, %v426_v28 }
 0x276   : > { %v422_v30 = vpop.permute.xlu0 %421 }
 0x277   : > { %v424_v32 = vmul.f32 %v422_v30, %v419_v29 }
 0x279   : > { %v429_v33 = vadd.f32 %v428_v31, %v424_v32 }
 0x27b   : > { %v437_v34 = vsel %vm436_vm4, %v429_v33, %v426_v28  ;;  %v790_v28 = vstv %s683_s24  ;;  %v1003_v33 = vld [vmem:[%s1428_s19 + $0x18] sm:$0xff] }
 0x27c   : > { %439 = vrot.lane.b32.xlu0 %v437_v34, %s1310_s21  ;;  %vm791_vm9 = vcmp.lt.s32.totalorder %v790_v28, %v1438_v1 }
 0x27d   : > { %v792_v32 = vsel %vm791_vm9, 1, %v1308_v9 }
 0x2ee   : > { %v440_v35 = vpop.permute.xlu0 %439 }
 0x2ef   : > { %442 = vst.msk [vmem:[#allocation2] sm:$0xff] %vm318_vm2, %v440_v35 }
 0x2f6   : > { %v444_v36 = vld [vmem:[#allocation2] sm:$0xff] }
 0x2f7   : > { %1059 = vmatmul.mubr.msk.f32.vlgmr.msra.gmra.mxu1 %vm318_vm2, %v444_v36 }
 0x2f8   : > { %1073 = vmatpush3.msra.mxu1 %v1461_v5  ;;  %1080 = vmatprep.mubr.msk.f32.mxu1 %vm1306_vm1, %v1305_v7  ;;  %v1000_v5 = vld [vmem:[%s1428_s19 + $0x10] sm:$0xff] }
 0x2f9   : > { %1074 = vmatprep.subr.mxu1 %v1305_v7 }
 0x2fa   : > { %1075 = vmatpush3.msra.mxu1 %v1456_v4  ;;  %v672_v4 = vsel %vm671_vm7, 1, %v1308_v9 }
 0x2fb   : > { %1076 = vmatprep.subr.mxu1 %v1305_v7 }
 0x2fc   : > { %1077 = vmatpush3.msra.mxu1 %v1448_v3 }
 0x2fd   : > { %1078 = vmatprep.subr.mxu1 %v1305_v7 }
 0x2fe   : > { %1079 = vmatpush3.msra.mxu1 %v1443_v2 }
 0x3b7   : > { %v516_v38 = vpop.f32.mrf.mxu1 }
 0x3b8   : > { %v527_v39 = vadd.f32 %v516_v38, %v1502_v10  ;;  %v520_v43 = vadd.f32 %v997_v42, %v516_v38 }
 0x3b9   : > { %v1060_v40 = vpop.f32.mrf.mxu1 }
 0x3ba   : > { %529 = vrot.lane.b32.xlu1 %v527_v39, %s1307_s18  ;;  %v999_v44 = vmul.f32 -1.442695, %v520_v43 }
 0x3bc   : > { %1175 = vpow2.f32 %v999_v44 }
 0x3be   : > { %554 = vperm.xlu1 %1167, %v552_v41  }
 0x3c2   : > { %545 = vrot.lane.b32.xlu1 %v444_v36, %s1309_s20 }
 0x3c9   : > { %v1176_v45 = vpop.eup %1175 }
 0x3ca   : > { %v524_v46 = vadd.f32 1.0, %v1176_v45 }
 0x3cc   : > { %1177 = vrcp.f32 %v524_v46 }
 0x3d9   : > { %v1178_v47 = vpop.eup %1177 }
 0x3da   : > { %v539_v55 = vsub.f32 1.0, %v1178_v47 }
 0x42c   : > { %v530_v48 = vpop.permute.xlu1 %529 }
 0x42d   : > { %v532_v49 = vmul.f32 %v1178_v47, %v530_v48 }
 0x42f   : > { %534 = vrot.lane.b32.xlu0 %v532_v49, %s1307_s18 }
 0x439   : > { %v555_v53 = vpop.permute.xlu1 %554 }
 0x43a   : > { %vm556_vm6 = vcmp.eq.s32.totalorder %v555_v53, 1 }
 0x43d   : > { %v546_v54 = vpop.permute.xlu1 %545 }
 0x43e   : > { %v548_v57 = vmul.f32 %v1178_v47, %v546_v54 }
 0x4a1   : > { %v535_v50 = vpop.permute.xlu0 %534 }
 0x4a2   : > { %v537_v51 = vadd.f32 %v997_v42, %v535_v50 }
 0x4a4   : > { %1179 = vtanh.f32 %v537_v51 }
 0x4b1   : > { %v1180_v52 = vpop.eup %1179 }
 0x4b2   : > { %541 = vrot.lane.b32.xlu0 %v1180_v52, %s1310_s21 }
 0x524   : > { %v542_v56 = vpop.permute.xlu0 %541 }
 0x525   : > { %v544_v58 = vmul.f32 %v542_v56, %v539_v55 }
 0x527   : > { %v549_v59 = vadd.f32 %v548_v57, %v544_v58 }
 0x529   : > { %v557_v60 = vsel %vm556_vm6, %v549_v59, %v546_v54 }
 0x52a   : > { %559 = vrot.lane.b32.xlu0 %v557_v60, %s1310_s21 }
 0x59c   : > { %v560_v61 = vpop.permute.xlu0 %559 }
 0x59d   : > { %562 = vst.msk [vmem:[#allocation2] sm:$0xff] %vm318_vm2, %v560_v61 }
 0x5a4   : > { %v564_v62 = vld [vmem:[#allocation2] sm:$0xff] }
 0x5a5   : > { %1070 = vmatmul.mubr.msk.f32.vlgmr.msra.gmra.mxu0 %vm318_vm2, %v564_v62 }
 0x665   : > { %v636_v0 = vpop.f32.mrf.mxu0 }
 0x666   : > { %v647_v2 = vadd.f32 %v636_v0, %v1502_v10  ;;  %v640_v6 = vadd.f32 %v1000_v5, %v636_v0 }
 0x667   : > { %v1071_v3 = vpop.f32.mrf.mxu0 }
 0x668   : > { %649 = vrot.lane.b32.xlu1 %v647_v2, %s1307_s18  ;;  %v1002_v7 = vmul.f32 -1.442695, %v640_v6 }
 0x66a   : > { %1181 = vpow2.f32 %v1002_v7 }
 0x66c   : > { %674 = vperm.xlu1 %1167, %v672_v4  }
 0x670   : > { %665 = vrot.lane.b32.xlu1 %v564_v62, %s1309_s20 }
 0x677   : > { %v1182_v8 = vpop.eup %1181 }
 0x678   : > { %v644_v11 = vadd.f32 1.0, %v1182_v8 }
 0x67a   : > { %1183 = vrcp.f32 %v644_v11 }
 0x687   : > { %v1184_v12 = vpop.eup %1183 }
 0x688   : > { %v659_v20 = vsub.f32 1.0, %v1184_v12 }
 0x6da   : > { %v650_v13 = vpop.permute.xlu1 %649 }
 0x6db   : > { %v652_v14 = vmul.f32 %v1184_v12, %v650_v13 }
 0x6dd   : > { %654 = vrot.lane.b32.xlu0 %v652_v14, %s1307_s18 }
 0x6e7   : > { %v675_v18 = vpop.permute.xlu1 %674 }
 0x6e8   : > { %vm676_vm8 = vcmp.eq.s32.totalorder %v675_v18, 1 }
 0x6eb   : > { %v666_v19 = vpop.permute.xlu1 %665 }
 0x6ec   : > { %v668_v22 = vmul.f32 %v1184_v12, %v666_v19 }
 0x74f   : > { %v655_v15 = vpop.permute.xlu0 %654 }
 0x750   : > { %v657_v16 = vadd.f32 %v1000_v5, %v655_v15 }
 0x752   : > { %1185 = vtanh.f32 %v657_v16 }
 0x75f   : > { %v1186_v17 = vpop.eup %1185 }
 0x760   : > { %661 = vrot.lane.b32.xlu0 %v1186_v17, %s1310_s21 }
 0x7d2   : > { %v662_v21 = vpop.permute.xlu0 %661 }
 0x7d3   : > { %v664_v23 = vmul.f32 %v662_v21, %v659_v20 }
 0x7d5   : > { %v669_v24 = vadd.f32 %v668_v22, %v664_v23 }
 0x7d7   : > { %v677_v25 = vsel %vm676_vm8, %v669_v24, %v666_v19 }
 0x7d8   : > { %679 = vrot.lane.b32.xlu0 %v677_v25, %s1310_s21 }
 0x84a   : > { %v680_v26 = vpop.permute.xlu0 %679 }
 0x84b   : > { %682 = vst.msk [vmem:[#allocation2] sm:$0xff] %vm318_vm2, %v680_v26 }
 0x852   : > { %v684_v27 = vld [vmem:[#allocation2] sm:$0xff] }
 0x853   : > { %1081 = vmatmul.mubr.msk.f32.vlgmr.msra.gmra.mxu1 %vm318_vm2, %v684_v27 }
 0x913   : > { %v756_v29 = vpop.f32.mrf.mxu1 }
 0x914   : > { %v767_v30 = vadd.f32 %v756_v29, %v1502_v10  ;;  %v760_v34 = vadd.f32 %v1003_v33, %v756_v29 }
 0x915   : > { %v1082_v31 = vpop.f32.mrf.mxu1 }
 0x916   : > { %769 = vrot.lane.b32.xlu1 %v767_v30, %s1307_s18  ;;  %v1005_v35 = vmul.f32 -1.442695, %v760_v34 }
 0x918   : > { %1187 = vpow2.f32 %v1005_v35 }
 0x91a   : > { %794 = vperm.xlu1 %1167, %v792_v32  }
 0x91e   : > { %785 = vrot.lane.b32.xlu1 %v684_v27, %s1309_s20 }
 0x925   : > { %v1188_v36 = vpop.eup %1187 }
 0x926   : > { %v764_v37 = vadd.f32 1.0, %v1188_v36 }
 0x928   : > { %1189 = vrcp.f32 %v764_v37 }
 0x935   : > { %v1190_v38 = vpop.eup %1189 }
 0x936   : > { %v779_v43 = vsub.f32 1.0, %v1190_v38 }
 0x988   : > { %v770_v39 = vpop.permute.xlu1 %769 }
 0x989   : > { %v772_v10 = vmul.f32 %v1190_v38, %v770_v39 }
 0x98b   : > { %774 = vrot.lane.b32.xlu0 %v772_v10, %s1307_s18 }
 0x995   : > { %v795_v9 = vpop.permute.xlu1 %794 }
 0x996   : > { %vm796_vm10 = vcmp.eq.s32.totalorder %v795_v9, 1 }
 0x999   : > { %v786_v42 = vpop.permute.xlu1 %785 }
 0x99a   : > { %v788_v45 = vmul.f32 %v1190_v38, %v786_v42 }
 0x9fd   : > { %v775_v1 = vpop.permute.xlu0 %774 }
 0x9fe   : > { %v777_v40 = vadd.f32 %v1003_v33, %v775_v1 }
 0xa00   : > { %1191 = vtanh.f32 %v777_v40 }
 0xa0d   : > { %v1192_v41 = vpop.eup %1191 }
 0xa0e   : > { %781 = vrot.lane.b32.xlu0 %v1192_v41, %s1310_s21 }
 0xa80   : > { %v782_v44 = vpop.permute.xlu0 %781 }
 0xa81   : > { %v784_v46 = vmul.f32 %v782_v44, %v779_v43 }
 0xa83   : > { %v789_v47 = vadd.f32 %v788_v45, %v784_v46 }
 0xa85   : > { %v797_v48 = vsel %vm796_vm10, %v789_v47, %v786_v42 }
 0xa86   : > { %799 = vrot.lane.b32.xlu0 %v797_v48, %s1310_s21 }
 0xaf8   : > { %v800_v49 = vpop.permute.xlu0 %799 }
 0xaf9   : > { %802 = vst.msk [vmem:[#allocation2] sm:$0xff] %vm318_vm2, %v800_v49 }
 0xafa PF: > { %p1006_p9 = scmp.ne.s32.totalorder %s1291_s29, 1 }
 0xafc   : > { %806 = sbr.rel (%p1006_p9) target bundleno = 3022 (0xbce), region = 60 }
 0xb01   : > { %v811_v50 = vld [vmem:[%s1616_s5 + $0x18] sm:$0xff]  ;;  %v1311_v51 = vmov 0.0   ;;  %v810_v52 = vld [vmem:[%s1616_s5 + $0x10] sm:$0xff]  ;;  %vm1312_vm11 = vmmov 0   ;;  %v809_v53 = vld [vmem:[%s1616_s5 + $0x8] sm:$0xff]  ;;  %vm819_vm12 = vcmask 261120  }
 0xb02   : > { %1083 = vmatprep.subr.mxu0 %v1311_v51  ;;  %1091 = vmatprep.mubr.msk.f32.mxu0 %vm1312_vm11, %v1311_v51  ;;  %v808_v54 = vld [vmem:[%s1616_s5] sm:$0xff]  ;;  %vm893_vm13 = vcmask 130048  }
 0xb03   : > { %1084 = vmatpush3.msra.mxu0 %v811_v50  ;;  %v807_v55 = vld [vmem:[#allocation2] sm:$0xff] }
 0xb04   : > { %1085 = vmatprep.subr.mxu0 %v1311_v51  ;;  %v1007_v56 = vld [vmem:[%s1617_s6] ss:$0 sm:$0xff] }
 0xb05   : > { %1086 = vmatpush3.msra.mxu0 %v810_v52 }
 0xb06   : > { %1087 = vmatprep.subr.mxu0 %v1311_v51 }
 0xb07   : > { %1088 = vmatpush3.msra.mxu0 %v809_v53 }
 0xb08   : > { %1089 = vmatprep.subr.mxu0 %v1311_v51 }
 0xb09   : > { %1090 = vmatpush3.msra.mxu0 %v808_v54 }
 0xb0a   : > { %1092 = vmatmul.mubr.msk.f32.vlgmr.msra.gmra.mxu0 %vm819_vm12, %v807_v55 }
 0xbca   : > { %v889_v57 = vpop.f32.mrf.mxu0 }
 0xbcb   : > { %v890_v58 = vadd.f32 %v1007_v56, %v889_v57 }
 0xbcc   : > { %v1093_v59 = vpop.f32.mrf.mxu0 }
 0xbcd   : > { %894 = vst.msk [vmem:[#allocation8] sm:$0xff] %vm893_vm13, %v890_v58 }
 0xbce PF: > { %p1578_p10 = scmp.eq.s32.totalorder %s982_s0, 1  ;;  %s1313_s18 = smov [#allocation8]  }
 0xbcf   : > { %s904_s20 = sshll.u32 %s1313_s18, 4  ;;  %s905_s20 = int_to_ptr.vmem [resolvable:$true] %s904_s20 }
 0xbd0   : > { %s1221_s21 = scalar_lea.vmem %s905_s20, 128  ;;  %p1228_p0 = scmp.lt.s32.totalorder %s905_s20, %s905_s20 }
 0xbd1   : > { %p1222_p11 = scmp.ne.s32.totalorder %s905_s20, %s1221_s21  ;;  %p1229_p1 = scmp.lt.s32.totalorder %s1221_s21, %s1221_s21 }
 0xbd3   : > { %p1223_p12 = pnand %p1222_p11, %p1578_p10  ;;  %p1230_p2 = por %p1229_p1, %p1228_p0 }
 0xbd5   : > { %p1224_p13 = pneg %p1223_p12 }
 0xbd7   : > { %p1231_p3 = pnand %p1230_p2, %p1224_p13 }
 0xbd9   : > { %1234 = shalt.err (!%p1231_p3)
}
 0xbda   : > { %1097 = dma.vmem_to_hbm [thread:$0]  (%p1578_p10), %s905_s20, 128, %s1618_s7, [#allocation7]  }
 0xbdb   : > { %1274 = dma.done.wait (%p1578_p10), [#allocation7], 128  }
 0xbdc   : > { %1276 = vsyncadd (%p1578_p10), [#allocation7], 4294967168 }
 0xbdd PF: > { %s22_s8 = sadd.s32 1, %s1299_s8   ;;  %s1623_s26 = smov %s1283_s27 }
 0xbde   : > { %p19_p4 = scmp.ge.s32.totalorder %s22_s8, 4   ;;  %s1624_s27 = smov %s1287_s28 }
 0xbdf   : > { %s1625_s28 = smov %s1408_s14  ;;  %s1626_s29 = smov %s1295_s30 }
 0xbe0   : > { %s1627_s30 = smov %s1629_s9  ;;  %21 = sbr.rel (!%p19_p4) target bundleno = 7 (0x7), region = 100 }
 0xbe5   :  { %917 = vsyncpa [#allocation6], 1 }
 0xbe6   :  { %919 = vsyncpa [#allocation6 + $0x1], 1 }
 0xbe7   :  { %920 = vsyncpa [#allocation7], 1 }
 0xbe8   :  { %922 = vsyncpa [#allocation7 + $0x1], 1 }

</bundles_post_ra>
